<compile_context>
chip_gen: v5e
topology: v5e:2x2
jax: 0.10.0
libtpu: 0.0.40
codegen_flags: <defaults>
</compile_context>

<pallas_src>
import jax
import jax.numpy as jnp
import numpy as np
from jax import lax
from jax.experimental import pallas as pl
from jax.experimental.pallas import tpu as pltpu


def make_fused_stack_kernel(N, C, H, W, Ch, L):
    Hp, Wp = H + 2, W + 2
    HpWp = Hp * Wp
    Lf = N * HpWp                        # flattened padded spatial (lane axis)
    # tap offsets in the flattened padded layout, tap index t = ky*3 + kx
    offsets = [(ky - 1) * Wp + (kx - 1) for ky in range(3) for kx in range(3)]

    def shift_left(a, k):
        """result[:, q] = a[:, (q + k) % Lf]   (k may be negative)."""
        k = k % Lf
        if k == 0:
            return a
        return jnp.concatenate([a[:, k:], a[:, :k]], axis=1)

    def kernel(xp_ref, mask_ref, w1_ref, w2_ref, o_ref):
        # xp_ref:   (N, C, Hp*Wp)  zero-padded NCHW activations
        # mask_ref: (1, N*Hp*Wp)   1.0 at interior pixels, 0.0 on the pad border
        # w1_ref:   (L, Ch, 9*C)   3x3 weights, col index = (ky*3 + kx)*C + cin
        # w2_ref:   (L, C, Ch)     1x1 weights
        # o_ref:    (N, C, H*W)
        mask = mask_ref[...]                                     # (1, Lf)

        # Fold the batch onto the lane axis -> (C, Lf), fully lane-dense.
        xpad = jnp.concatenate(
            [xp_ref[n].astype(jnp.float32) for n in range(N)], axis=1)

        for l in range(L):               # all layers fused; x stays in VMEM
            h = jnp.maximum(xpad, 0.0)                           # ReLU
            # im2col: stack the 9 shifted copies on the contraction axis.
            patches = jnp.concatenate(
                [shift_left(h, off) for off in offsets], axis=0)  # (9C, Lf)
            c1 = jnp.dot(w1_ref[l], patches,
                         preferred_element_type=jnp.float32)     # (Ch, Lf)
            h2 = jnp.maximum(c1, 0.0)                            # ReLU
            y = jnp.dot(w2_ref[l], h2,
                        preferred_element_type=jnp.float32)      # (C, Lf)
            # Zero border garbage, residual add (border of xpad stays zero).
            xpad = xpad + y * mask

        yf = jnp.maximum(xpad, 0.0)                              # final ReLU
        # Write interior pixels as a lane-dense (C, H*W) slab per image.
        for n in range(N):
            img = yf[:, n * HpWp:(n + 1) * HpWp].reshape(C, Hp, Wp)
            img = img[:, 1:H + 1, 1:W + 1].reshape(C, H * W)
            o_ref[n] = img.astype(o_ref.dtype)

    return kernel


@jax.jit
def residual_stack_forward(x_nchw, w1_stack, w2_stack):
    """ResidualStack.forward.

    x_nchw:   (N, C, H, W)
    w1_stack: (L, 9, Cin, Chid)  == torch (Chid, Cin, 3, 3), taps ky*3+kx
    w2_stack: (L, Chid, Cout)    == torch (Cout, Chid, 1, 1)
    """
    N, C, H, W = x_nchw.shape
    L, _, _, Ch = w1_stack.shape
    Hp, Wp = H + 2, W + 2

    # One-time zero pad of the spatial dims (stays NCHW -> no transpose).
    xp = jnp.pad(x_nchw, ((0, 0), (0, 0), (1, 1), (1, 1)))
    xp = xp.reshape(N, C, Hp * Wp)

    # Kernel-friendly weight layouts (tiny, one-time).
    w1k = jnp.transpose(w1_stack, (0, 3, 1, 2)).reshape(L, Ch, 9 * C)
    w2k = jnp.transpose(w2_stack, (0, 2, 1))                    # (L, C, Ch)

    # Interior mask (static constant, baked at trace time).
    m = np.zeros((N, Hp, Wp), np.float32)
    m[:, 1:H + 1, 1:W + 1] = 1.0
    mask = jnp.asarray(m.reshape(1, N * Hp * Wp))

    kernel = make_fused_stack_kernel(N, C, H, W, Ch, L)
    out = pl.pallas_call(
        kernel,
        out_shape=jax.ShapeDtypeStruct((N, C, H * W), x_nchw.dtype),
        in_specs=[pl.BlockSpec(memory_space=pltpu.MemorySpace.VMEM)
                  for _ in range(4)],
        out_specs=pl.BlockSpec(memory_space=pltpu.MemorySpace.VMEM),
    )(xp, mask, w1k, w2k)
    return out.reshape(N, C, H, W)


# ---------------- pure-JAX reference (for correctness check) ----------------
def residual_stack_reference(x_nchw, w1_stack, w2_stack):
    x = jnp.transpose(x_nchw, (0, 2, 3, 1))          # NHWC
    L = w1_stack.shape[0]
    for i in range(L):
        C, Ch = w1_stack.shape[2], w1_stack.shape[3]
        # (9, Cin, Chid) -> HWIO (3,3,Cin,Chid)
        k3 = w1_stack[i].reshape(3, 3, C, Ch)
        h = jax.nn.relu(x)
        h = lax.conv_general_dilated(
            h, k3, window_strides=(1, 1), padding="SAME",
            dimension_numbers=("NHWC", "HWIO", "NHWC"))
        h = jax.nn.relu(h)
        k1 = w2_stack[i].reshape(1, 1, Ch, C)
        h = lax.conv_general_dilated(
            h, k1, window_strides=(1, 1), padding="VALID",
            dimension_numbers=("NHWC", "HWIO", "NHWC"))
        x = x + h
    x = jax.nn.relu(x)
    return jnp.transpose(x, (0, 3, 1, 2))


if __name__ == "__main__":
    # Module hyper-params (small, consistent with the forward):
    #   in_channels = num_hiddens = 4, num_residual_hiddens = 8,
    #   num_residual_layers = 2, batch = 2, spatial = 16
    N, C, H, W = 2, 4, 16, 16
    Ch = 8
    L = 2

    key = jax.random.PRNGKey(0)
    kx, k1, k2 = jax.random.split(key, 3)

    x = jax.random.normal(kx, (N, C, H, W), dtype=jnp.float32)
    # deterministic synthetic weights (no checkpoint loading)
    w1_stack = 0.1 * jax.random.normal(k1, (L, 9, C, Ch), dtype=jnp.float32)
    w2_stack = 0.1 * jax.random.normal(k2, (L, Ch, C), dtype=jnp.float32)

    out = residual_stack_forward(x, w1_stack, w2_stack)
    out = jax.block_until_ready(out)

    ref = jax.block_until_ready(residual_stack_reference(x, w1_stack, w2_stack))
    np.testing.assert_allclose(np.asarray(out), np.asarray(ref),
                               rtol=1e-5, atol=1e-5)
    assert out.shape == (N, C, H, W)

    print("KERNEL_OK")
</pallas_src>

<mosaic_0001>
module attributes {stable_mosaic.version = 11 : i64} {
  func.func @kernel(%arg0: memref<2x4x324xf32, #tpu.memory_space<vmem>>, %arg1: memref<1x648xf32, #tpu.memory_space<vmem>>, %arg2: memref<2x8x36xf32, #tpu.memory_space<vmem>>, %arg3: memref<2x4x8xf32, #tpu.memory_space<vmem>>, %arg4: memref<2x4x256xf32, #tpu.memory_space<vmem>>) attributes {dimension_semantics = [], scalar_prefetch = 0 : i64, scratch_operands = 0 : i64, tpu.core_type = #tpu.core_type<tc>} {
    %c0 = arith.constant 0 : index
    %c0_0 = arith.constant 0 : index
    %0 = vector.load %arg1[%c0, %c0_0] : memref<1x648xf32, #tpu.memory_space<vmem>>, vector<1x648xf32>
    %c0_1 = arith.constant 0 : index
    %c0_2 = arith.constant 0 : index
    %c0_3 = arith.constant 0 : index
    %1 = vector.load %arg0[%c0_1, %c0_2, %c0_3] : memref<2x4x324xf32, #tpu.memory_space<vmem>>, vector<1x4x324xf32>
    %2 = vector.shape_cast %1 : vector<1x4x324xf32> to vector<4x324xf32>
    %c1 = arith.constant 1 : index
    %c0_4 = arith.constant 0 : index
    %c0_5 = arith.constant 0 : index
    %3 = vector.load %arg0[%c1, %c0_4, %c0_5] : memref<2x4x324xf32, #tpu.memory_space<vmem>>, vector<1x4x324xf32>
    %4 = vector.shape_cast %3 : vector<1x4x324xf32> to vector<4x324xf32>
    %5 = tpu.concatenate %2, %4 in 1 : vector<4x324xf32>, vector<4x324xf32> -> vector<4x648xf32>
    %cst = arith.constant 0.000000e+00 : f32
    %6 = vector.broadcast %cst : f32 to vector<4x648xf32>
    %7 = arith.maximumf %5, %6 : vector<4x648xf32>
    %8 = vector.extract_strided_slice %7 {offsets = [0, 629], sizes = [4, 19], strides = [1, 1]} : vector<4x648xf32> to vector<4x19xf32>
    %9 = vector.extract_strided_slice %7 {offsets = [0, 0], sizes = [4, 629], strides = [1, 1]} : vector<4x648xf32> to vector<4x629xf32>
    %10 = tpu.concatenate %8, %9 in 1 : vector<4x19xf32>, vector<4x629xf32> -> vector<4x648xf32>
    %11 = vector.extract_strided_slice %7 {offsets = [0, 630], sizes = [4, 18], strides = [1, 1]} : vector<4x648xf32> to vector<4x18xf32>
    %12 = vector.extract_strided_slice %7 {offsets = [0, 0], sizes = [4, 630], strides = [1, 1]} : vector<4x648xf32> to vector<4x630xf32>
    %13 = tpu.concatenate %11, %12 in 1 : vector<4x18xf32>, vector<4x630xf32> -> vector<4x648xf32>
    %14 = vector.extract_strided_slice %7 {offsets = [0, 631], sizes = [4, 17], strides = [1, 1]} : vector<4x648xf32> to vector<4x17xf32>
    %15 = vector.extract_strided_slice %7 {offsets = [0, 0], sizes = [4, 631], strides = [1, 1]} : vector<4x648xf32> to vector<4x631xf32>
    %16 = tpu.concatenate %14, %15 in 1 : vector<4x17xf32>, vector<4x631xf32> -> vector<4x648xf32>
    %17 = vector.extract_strided_slice %7 {offsets = [0, 647], sizes = [4, 1], strides = [1, 1]} : vector<4x648xf32> to vector<4x1xf32>
    %18 = vector.extract_strided_slice %7 {offsets = [0, 0], sizes = [4, 647], strides = [1, 1]} : vector<4x648xf32> to vector<4x647xf32>
    %19 = tpu.concatenate %17, %18 in 1 : vector<4x1xf32>, vector<4x647xf32> -> vector<4x648xf32>
    %20 = vector.extract_strided_slice %7 {offsets = [0, 1], sizes = [4, 647], strides = [1, 1]} : vector<4x648xf32> to vector<4x647xf32>
    %21 = vector.extract_strided_slice %7 {offsets = [0, 0], sizes = [4, 1], strides = [1, 1]} : vector<4x648xf32> to vector<4x1xf32>
    %22 = tpu.concatenate %20, %21 in 1 : vector<4x647xf32>, vector<4x1xf32> -> vector<4x648xf32>
    %23 = vector.extract_strided_slice %7 {offsets = [0, 17], sizes = [4, 631], strides = [1, 1]} : vector<4x648xf32> to vector<4x631xf32>
    %24 = vector.extract_strided_slice %7 {offsets = [0, 0], sizes = [4, 17], strides = [1, 1]} : vector<4x648xf32> to vector<4x17xf32>
    %25 = tpu.concatenate %23, %24 in 1 : vector<4x631xf32>, vector<4x17xf32> -> vector<4x648xf32>
    %26 = vector.extract_strided_slice %7 {offsets = [0, 18], sizes = [4, 630], strides = [1, 1]} : vector<4x648xf32> to vector<4x630xf32>
    %27 = vector.extract_strided_slice %7 {offsets = [0, 0], sizes = [4, 18], strides = [1, 1]} : vector<4x648xf32> to vector<4x18xf32>
    %28 = tpu.concatenate %26, %27 in 1 : vector<4x630xf32>, vector<4x18xf32> -> vector<4x648xf32>
    %29 = vector.extract_strided_slice %7 {offsets = [0, 19], sizes = [4, 629], strides = [1, 1]} : vector<4x648xf32> to vector<4x629xf32>
    %30 = vector.extract_strided_slice %7 {offsets = [0, 0], sizes = [4, 19], strides = [1, 1]} : vector<4x648xf32> to vector<4x19xf32>
    %31 = tpu.concatenate %29, %30 in 1 : vector<4x629xf32>, vector<4x19xf32> -> vector<4x648xf32>
    %32 = tpu.concatenate %10, %13, %16, %19, %7, %22, %25, %28, %31 in 0 : vector<4x648xf32>, vector<4x648xf32>, vector<4x648xf32>, vector<4x648xf32>, vector<4x648xf32>, vector<4x648xf32>, vector<4x648xf32>, vector<4x648xf32>, vector<4x648xf32> -> vector<36x648xf32>
    %c0_6 = arith.constant 0 : index
    %c0_7 = arith.constant 0 : index
    %c0_8 = arith.constant 0 : index
    %33 = vector.load %arg2[%c0_6, %c0_7, %c0_8] : memref<2x8x36xf32, #tpu.memory_space<vmem>>, vector<1x8x36xf32>
    %34 = vector.shape_cast %33 : vector<1x8x36xf32> to vector<8x36xf32>
    %cst_9 = arith.constant dense<0.000000e+00> : vector<8x648xf32>
    %35 = tpu.matmul %34, %32, %cst_9 {dimension_numbers = #tpu.dot_dimension_numbers<[1], [0], [0], [1], [0, 0, 1, 1], [], []>} : vector<8x36xf32>, vector<36x648xf32>, vector<8x648xf32> -> vector<8x648xf32>
    %cst_10 = arith.constant 0.000000e+00 : f32
    %36 = vector.broadcast %cst_10 : f32 to vector<8x648xf32>
    %37 = arith.maximumf %35, %36 : vector<8x648xf32>
    %c0_11 = arith.constant 0 : index
    %c0_12 = arith.constant 0 : index
    %c0_13 = arith.constant 0 : index
    %38 = vector.load %arg3[%c0_11, %c0_12, %c0_13] : memref<2x4x8xf32, #tpu.memory_space<vmem>>, vector<1x4x8xf32>
    %39 = vector.shape_cast %38 : vector<1x4x8xf32> to vector<4x8xf32>
    %cst_14 = arith.constant dense<0.000000e+00> : vector<4x648xf32>
    %40 = tpu.matmul %39, %37, %cst_14 {dimension_numbers = #tpu.dot_dimension_numbers<[1], [0], [0], [1], [0, 0, 1, 1], [], []>} : vector<4x8xf32>, vector<8x648xf32>, vector<4x648xf32> -> vector<4x648xf32>
    %41 = vector.broadcast %0 : vector<1x648xf32> to vector<4x648xf32>
    %42 = arith.mulf %40, %41 : vector<4x648xf32>
    %43 = arith.addf %5, %42 : vector<4x648xf32>
    %cst_15 = arith.constant 0.000000e+00 : f32
    %44 = vector.broadcast %cst_15 : f32 to vector<4x648xf32>
    %45 = arith.maximumf %43, %44 : vector<4x648xf32>
    %46 = vector.extract_strided_slice %45 {offsets = [0, 629], sizes = [4, 19], strides = [1, 1]} : vector<4x648xf32> to vector<4x19xf32>
    %47 = vector.extract_strided_slice %45 {offsets = [0, 0], sizes = [4, 629], strides = [1, 1]} : vector<4x648xf32> to vector<4x629xf32>
    %48 = tpu.concatenate %46, %47 in 1 : vector<4x19xf32>, vector<4x629xf32> -> vector<4x648xf32>
    %49 = vector.extract_strided_slice %45 {offsets = [0, 630], sizes = [4, 18], strides = [1, 1]} : vector<4x648xf32> to vector<4x18xf32>
    %50 = vector.extract_strided_slice %45 {offsets = [0, 0], sizes = [4, 630], strides = [1, 1]} : vector<4x648xf32> to vector<4x630xf32>
    %51 = tpu.concatenate %49, %50 in 1 : vector<4x18xf32>, vector<4x630xf32> -> vector<4x648xf32>
    %52 = vector.extract_strided_slice %45 {offsets = [0, 631], sizes = [4, 17], strides = [1, 1]} : vector<4x648xf32> to vector<4x17xf32>
    %53 = vector.extract_strided_slice %45 {offsets = [0, 0], sizes = [4, 631], strides = [1, 1]} : vector<4x648xf32> to vector<4x631xf32>
    %54 = tpu.concatenate %52, %53 in 1 : vector<4x17xf32>, vector<4x631xf32> -> vector<4x648xf32>
    %55 = vector.extract_strided_slice %45 {offsets = [0, 647], sizes = [4, 1], strides = [1, 1]} : vector<4x648xf32> to vector<4x1xf32>
    %56 = vector.extract_strided_slice %45 {offsets = [0, 0], sizes = [4, 647], strides = [1, 1]} : vector<4x648xf32> to vector<4x647xf32>
    %57 = tpu.concatenate %55, %56 in 1 : vector<4x1xf32>, vector<4x647xf32> -> vector<4x648xf32>
    %58 = vector.extract_strided_slice %45 {offsets = [0, 1], sizes = [4, 647], strides = [1, 1]} : vector<4x648xf32> to vector<4x647xf32>
    %59 = vector.extract_strided_slice %45 {offsets = [0, 0], sizes = [4, 1], strides = [1, 1]} : vector<4x648xf32> to vector<4x1xf32>
    %60 = tpu.concatenate %58, %59 in 1 : vector<4x647xf32>, vector<4x1xf32> -> vector<4x648xf32>
    %61 = vector.extract_strided_slice %45 {offsets = [0, 17], sizes = [4, 631], strides = [1, 1]} : vector<4x648xf32> to vector<4x631xf32>
    %62 = vector.extract_strided_slice %45 {offsets = [0, 0], sizes = [4, 17], strides = [1, 1]} : vector<4x648xf32> to vector<4x17xf32>
    %63 = tpu.concatenate %61, %62 in 1 : vector<4x631xf32>, vector<4x17xf32> -> vector<4x648xf32>
    %64 = vector.extract_strided_slice %45 {offsets = [0, 18], sizes = [4, 630], strides = [1, 1]} : vector<4x648xf32> to vector<4x630xf32>
    %65 = vector.extract_strided_slice %45 {offsets = [0, 0], sizes = [4, 18], strides = [1, 1]} : vector<4x648xf32> to vector<4x18xf32>
    %66 = tpu.concatenate %64, %65 in 1 : vector<4x630xf32>, vector<4x18xf32> -> vector<4x648xf32>
    %67 = vector.extract_strided_slice %45 {offsets = [0, 19], sizes = [4, 629], strides = [1, 1]} : vector<4x648xf32> to vector<4x629xf32>
    %68 = vector.extract_strided_slice %45 {offsets = [0, 0], sizes = [4, 19], strides = [1, 1]} : vector<4x648xf32> to vector<4x19xf32>
    %69 = tpu.concatenate %67, %68 in 1 : vector<4x629xf32>, vector<4x19xf32> -> vector<4x648xf32>
    %70 = tpu.concatenate %48, %51, %54, %57, %45, %60, %63, %66, %69 in 0 : vector<4x648xf32>, vector<4x648xf32>, vector<4x648xf32>, vector<4x648xf32>, vector<4x648xf32>, vector<4x648xf32>, vector<4x648xf32>, vector<4x648xf32>, vector<4x648xf32> -> vector<36x648xf32>
    %c1_16 = arith.constant 1 : index
    %c0_17 = arith.constant 0 : index
    %c0_18 = arith.constant 0 : index
    %71 = vector.load %arg2[%c1_16, %c0_17, %c0_18] : memref<2x8x36xf32, #tpu.memory_space<vmem>>, vector<1x8x36xf32>
    %72 = vector.shape_cast %71 : vector<1x8x36xf32> to vector<8x36xf32>
    %cst_19 = arith.constant dense<0.000000e+00> : vector<8x648xf32>
    %73 = tpu.matmul %72, %70, %cst_19 {dimension_numbers = #tpu.dot_dimension_numbers<[1], [0], [0], [1], [0, 0, 1, 1], [], []>} : vector<8x36xf32>, vector<36x648xf32>, vector<8x648xf32> -> vector<8x648xf32>
    %cst_20 = arith.constant 0.000000e+00 : f32
    %74 = vector.broadcast %cst_20 : f32 to vector<8x648xf32>
    %75 = arith.maximumf %73, %74 : vector<8x648xf32>
    %c1_21 = arith.constant 1 : index
    %c0_22 = arith.constant 0 : index
    %c0_23 = arith.constant 0 : index
    %76 = vector.load %arg3[%c1_21, %c0_22, %c0_23] : memref<2x4x8xf32, #tpu.memory_space<vmem>>, vector<1x4x8xf32>
    %77 = vector.shape_cast %76 : vector<1x4x8xf32> to vector<4x8xf32>
    %cst_24 = arith.constant dense<0.000000e+00> : vector<4x648xf32>
    %78 = tpu.matmul %77, %75, %cst_24 {dimension_numbers = #tpu.dot_dimension_numbers<[1], [0], [0], [1], [0, 0, 1, 1], [], []>} : vector<4x8xf32>, vector<8x648xf32>, vector<4x648xf32> -> vector<4x648xf32>
    %79 = vector.broadcast %0 : vector<1x648xf32> to vector<4x648xf32>
    %80 = arith.mulf %78, %79 : vector<4x648xf32>
    %81 = arith.addf %43, %80 : vector<4x648xf32>
    %cst_25 = arith.constant 0.000000e+00 : f32
    %82 = vector.broadcast %cst_25 : f32 to vector<4x648xf32>
    %83 = arith.maximumf %81, %82 : vector<4x648xf32>
    %84 = vector.extract_strided_slice %83 {offsets = [0, 0], sizes = [4, 324], strides = [1, 1]} : vector<4x648xf32> to vector<4x324xf32>
    %85 = vector.shape_cast %84 : vector<4x324xf32> to vector<4x18x18xf32>
    %86 = vector.extract_strided_slice %85 {offsets = [0, 1, 1], sizes = [4, 16, 16], strides = [1, 1, 1]} : vector<4x18x18xf32> to vector<4x16x16xf32>
    %87 = vector.shape_cast %86 : vector<4x16x16xf32> to vector<4x256xf32>
    %c0_26 = arith.constant 0 : index
    %c0_27 = arith.constant 0 : index
    %c0_28 = arith.constant 0 : index
    %88 = vector.load %arg4[%c0_26, %c0_27, %c0_28] : memref<2x4x256xf32, #tpu.memory_space<vmem>>, vector<1x4x256xf32>
    %89 = vector.shape_cast %88 : vector<1x4x256xf32> to vector<4x256xf32>
    %90 = vector.shape_cast %87 : vector<4x256xf32> to vector<1x4x256xf32>
    tpu.vector_store %arg4[%c0_26, %c0_27, %c0_28], %90 {strides = array<i32>} : memref<2x4x256xf32, #tpu.memory_space<vmem>>, vector<1x4x256xf32>,
    %91 = vector.extract_strided_slice %83 {offsets = [0, 324], sizes = [4, 324], strides = [1, 1]} : vector<4x648xf32> to vector<4x324xf32>
    %92 = vector.shape_cast %91 : vector<4x324xf32> to vector<4x18x18xf32>
    %93 = vector.extract_strided_slice %92 {offsets = [0, 1, 1], sizes = [4, 16, 16], strides = [1, 1, 1]} : vector<4x18x18xf32> to vector<4x16x16xf32>
    %94 = vector.shape_cast %93 : vector<4x16x16xf32> to vector<4x256xf32>
    %c1_29 = arith.constant 1 : index
    %c0_30 = arith.constant 0 : index
    %c0_31 = arith.constant 0 : index
    %95 = vector.load %arg4[%c1_29, %c0_30, %c0_31] : memref<2x4x256xf32, #tpu.memory_space<vmem>>, vector<1x4x256xf32>
    %96 = vector.shape_cast %95 : vector<1x4x256xf32> to vector<4x256xf32>
    %97 = vector.shape_cast %94 : vector<4x256xf32> to vector<1x4x256xf32>
    tpu.vector_store %arg4[%c1_29, %c0_30, %c0_31], %97 {strides = array<i32>} : memref<2x4x256xf32, #tpu.memory_space<vmem>>, vector<1x4x256xf32>,
    return
  }
}

</mosaic_0001>

<bundles_post_ra>
// kernel: residual_stack_forward.1
= control target key start
LH: loop header
LB: loop body
LE: loop exit
PB: predicated region body
PF: predicated region fallthrough
CT: control target
= control target key end

     0   :  { %s2430_s23 = smov 109   ;;  %s2432_s24 = smov 110   ;;  %vm261_vm0 = vcmask 891904   ;;  %vm325_vm1 = vcmask 1043456   ;;  %vm237_vm2 = vcmask 900096   ;;  %vm185_vm3 = vcmask 1039360   ;;  %s3618_s0 = inlined_call_operand.vmem [shape: f32[2,4,324], index: 0, kind: input, shape index: {}]   ;;  %s3619_s2 = inlined_call_operand.vmem [shape: f32[2,8,36], index: 2, kind: input, shape index: {}]   ;;  %s3620_s3 = inlined_call_operand.vmem [shape: f32[2,4,8], index: 3, kind: input, shape index: {}]   ;;  %s3621_s1 = inlined_call_operand.vmem [shape: f32[1,648], index: 1, kind: input, shape index: {}]   ;;  %s3622_s4 = inlined_call_operand.vmem [shape: f32[2,4,256], index: 4, kind: output, shape index: {}]  }
   0x1   :  { %v18_v0 = vld [vmem:[%s3618_s0] sm:$0xff]  ;;  %v19_v1 = vld [vmem:[%s3618_s0 + $0x8] sm:$0xf]  ;;  %v2148_v2 = vld [vmem:[%s3618_s0 + $0xc] sm:$0xff]  ;;  %s2433_s25 = smov 111   ;;  %s2434_s26 = smov 68  }
   0x2   :  { %25 = vst [vmem:[#allocation1] ss:$2 sm:$0xff] %v18_v0  ;;  %v2149_v3 = vld [vmem:[%s3618_s0 + $0x14] sm:$0xf]  ;;  %s2431_s0 = smov 127   ;;  %s2435_s27 = smov 1  }
   0x3   :  { %27 = vst [vmem:[#allocation1 + $0x10] ss:$2 sm:$0xff] %v19_v1  ;;  %s2436_s28 = smov 7   ;;  %s2437_s29 = smov 18   ;;  %vm209_vm4 = vcmask 908288   ;;  %vm48_vm5 = vcmask 556032  }
   0x4   :  { %s2438_s30 = smov 17   ;;  %s2439_s5 = smov 118   ;;  %vm165_vm6 = vcmask 7168   ;;  %vm138_vm7 = vcmask 138240   ;;  %vm114_vm8 = vcmask 146432   ;;  %vm85_vm9 = vcmask 154624  }
   0x5   :  { %s2440_s6 = smov 19   ;;  %s2441_s7 = smov 121   ;;  %vm68_vm10 = vcmask 89088   ;;  %vm101_vm11 = vcmask 80896   ;;  %vm125_vm12 = vcmask 72704   ;;  %vm351_vm13 = vcmask 293888  }
   0x6   :  { %s2442_s8 = smov 10   ;;  %s2443_s9 = smov 9   ;;  %vm271_vm14 = vcmask 957440   ;;  %vm3623_vm15 = vcmask 56320  }
   0x7   :  { %s2444_s10 = smov 11   ;;  %s2445_s11 = smov 119  }
   0x8   :  { %s2446_s12 = smov 117   ;;  %s2448_s21 = smov 92  }
   0x9   :  { %v2508_v4 = vld.sshfl [vmem:[#allocation1] sm:$0xff pattern:$0x75316420]  ;;  %v2510_v5 = vld.sshfl [vmem:[#allocation1 + $0x8] sm:$0xff pattern:$0x75316420] }
   0xa   :  { %v2513_v6 = vmax.f32 %v2508_v4, 0.0  ;;  %v2516_v7 = vmax.f32 %v2510_v5, 0.0  ;;  %36 = vst [vmem:[#allocation1] ss:$2 sm:$0xff] %v2148_v2  ;;  %s2449_s22 = smov 20   ;;  %s2468_s13 = smov 80  }
   0xb   :  { %v2518_v8 = vld.sshfl [vmem:[#allocation1 + $0x10] sm:$0xff pattern:$0x75316420]  ;;  %s2469_s14 = smov 16  }
   0xc   :  { %v2235_v9 = vpack.i.bf16 %v2516_v7, %v2513_v6  ;;  %38 = vst [vmem:[#allocation1 + $0x10] ss:$2 sm:$0xff] %v2149_v3  ;;  %249 = vrot.lane.b32.xlu2 %v2513_v6, %s2430_s23 }
   0xe   :  { %2236 = vrot.lane.b32.xlu0 %v2235_v9, %s2431_s0  ;;  %2231 = vrot.lane.b32.xlu1 %v2235_v9, %s2432_s24 }
  0x11   :  { %v39_v10 = vld.sshfl [vmem:[#allocation1] sm:$0xff pattern:$0x75316420]  ;;  %v40_v12 = vld.sshfl [vmem:[#allocation1 + $0x8] sm:$0xff pattern:$0x75316420] }
  0x13   :  { %v41_v11 = vld.sshfl [vmem:[#allocation1 + $0x10] sm:$0xff pattern:$0x75316420] }
  0x14   :  { %251 = vrot.lane.b32.xlu2 %v2516_v7, %s2430_s23 }
  0x16   :  { %2241 = vrot.lane.b32.xlu1 %v2235_v9, %s2433_s25  ;;  %42 = vrot.lane.b32.xlu0 %v39_v10, %s2434_s26 }
  0x1c   :  { %2251 = vrot.lane.b32.xlu2 %v2235_v9, %s2437_s29 }
  0x1e   :  { %46 = vrot.lane.b32.xlu1 %v41_v11, %s2434_s26  ;;  %44 = vrot.lane.b32.xlu0 %v40_v12, %s2434_s26  ;;  %s2452_s26 = smov 112  }
  0x24   :  { %244 = vrot.lane.b32.xlu2 %v2513_v6, %s2439_s5 }
  0x26   :  { %2246 = vrot.lane.b32.xlu0 %v2235_v9, %s2435_s27  ;;  %192 = vrot.lane.b32.xlu1 %v2513_v6, %s2436_s28 }
  0x2e   :  { %2256 = vrot.lane.b32.xlu0 %v2235_v9, %s2438_s30 }
  0x36   :  { %2261 = vrot.lane.b32.xlu0 %v2235_v9, %s2440_s6 }
  0x66   :  { %v250_v13 = vpop.permute.xlu2 %249 }
  0x6e   :  { %v2537_v14 = vpop.permute.xlu2 %251 }
  0x6f   :  { %v262_v15 = vsel %vm261_vm0, %v250_v13, %v2537_v14 }
  0x70   :  { %2150 = vmatpush.msk.msra.mxu0 %vm325_vm1, %v262_v15 }
  0x76   :  { %v2626_v44 = vpop.permute.xlu2 %2251 }
  0x77   :  { %v2254_v62 = vunpack.i.h.bf16 %v2626_v44  ;;  %v2253_v1 = vunpack.i.l.bf16 %v2626_v44 }
  0x7e   :  { %v2628_v45 = vpop.permute.xlu2 %244 }
  0x80   :  { %v2542_v16 = vpop.permute.xlu0 %2236  ;;  %v2544_v17 = vpop.permute.xlu1 %2231 }
  0x81   :  { %v2234_v18 = vunpack.i.h.bf16 %v2544_v17  ;;  %v2233_v19 = vunpack.i.l.bf16 %v2544_v17  ;;  %v2239_v20 = vunpack.i.h.bf16 %v2542_v16  ;;  %v2238_v21 = vunpack.i.l.bf16 %v2542_v16 }
  0x83   :  { %v238_v22 = vsel %vm237_vm2, %v2233_v19, %v2234_v18  ;;  %v186_v23 = vsel %vm185_vm3, %v2238_v21, %v2239_v20 }
  0x84   :  { %v313_v26 = vrot.slane %v238_v22, 4  ;;  %v300_v29 = vrot.slane %v186_v23, 4 }
  0x86   :  { %v338_v32 = vsel %vm325_vm1, %v2513_v6, %v300_v29 }
  0x88   :  { %v2556_v24 = vpop.permute.xlu1 %2241  ;;  %v43_v25 = vpop.permute.xlu0 %42 }
  0x89   :  { %v2244_v27 = vunpack.i.h.bf16 %v2556_v24  ;;  %v2243_v28 = vunpack.i.l.bf16 %v2556_v24  ;;  %v2581_v38 = vsel %vm48_vm5, %v2518_v8, %v43_v25 }
  0x8a   :  { %v2586_v39 = vmax.f32 %v2581_v38, 0.0 }
  0x8b   :  { %v210_v30 = vsel %vm209_vm4, %v2243_v28, %v2244_v27 }
  0x8c   :  { %v344_v31 = vsel %vm325_vm1, %v210_v30, %v313_v26 }
  0x8d   :  { %380 = vmatpush.msra.mxu0 %v344_v31 }
  0x8f   :  { %381 = vmatpush.msra.mxu0 %v338_v32 }
  0x90   :  { %v2566_v33 = vpop.permute.xlu1 %46  ;;  %v45_v34 = vpop.permute.xlu0 %44 }
  0x91   :  { %v2569_v35 = vmax.f32 %v2566_v33, 0.0  ;;  %v2571_v36 = vsel %vm48_vm5, %v43_v25, %v45_v34  ;;  %v2591_v41 = vsel %vm48_vm5, %v45_v34, %v2566_v33  ;;  %v115_v25 = vsel %vm114_vm8, %v2253_v1, %v2254_v62 }
  0x92   :  { %v2574_v37 = vmax.f32 %v2571_v36, 0.0  ;;  %v2598_v42 = vmax.f32 %v2591_v41, 0.0  ;;  %v275_v34 = vrot.slane %v115_v25, 4  ;;  %vm3624_vm5 = vcmask 965632  }
  0x93   :  { %150 = vrot.lane.b32.xlu2 %v2569_v35, %s2441_s7  ;;  %259 = vrot.lane.b32.xlu0 %v2569_v35, %s2430_s23 }
  0x94   :  { %255 = vrot.lane.b32.xlu1 %v2574_v37, %s2430_s23  ;;  %v2265_v40 = vpack.i.bf16 %v2574_v37, %v2586_v39  ;;  %v2280_v43 = vpack.i.bf16 %v2569_v35, %v2598_v42 }
  0x98   :  { %v2630_v46 = vpop.permute.xlu0 %2246  ;;  %v2640_v51 = vpop.permute.xlu1 %192 }
  0x99   :  { %v2249_v58 = vunpack.i.h.bf16 %v2630_v46  ;;  %v2248_v61 = vunpack.i.l.bf16 %v2630_v46 }
  0x9b   :  { %253 = vrot.lane.b32.xlu0 %v2586_v39, %s2430_s23  ;;  %2266 = vrot.lane.b32.xlu2 %v2265_v40, %s2432_s24 }
  0x9c   :  { %2271 = vrot.lane.b32.xlu1 %v2265_v40, %s2431_s0 }
  0xa0   :  { %v2634_v48 = vpop.permute.xlu0 %2256 }
  0xa1   :  { %v2259_v2 = vunpack.i.h.bf16 %v2634_v48  ;;  %v2258_v3 = vunpack.i.l.bf16 %v2634_v48 }
  0xa3   :  { %2281 = vrot.lane.b32.xlu0 %v2280_v43, %s2442_s8  ;;  %2276 = vrot.lane.b32.xlu2 %v2265_v40, %s2433_s25 }
  0xa4   :  { %2286 = vrot.lane.b32.xlu1 %v2280_v43, %s2443_s9 }
  0xa8   :  { %v2638_v50 = vpop.permute.xlu0 %2261 }
  0xa9   :  { %v2264_v26 = vunpack.i.h.bf16 %v2638_v50 }
  0xab   :  { %2311 = vrot.lane.b32.xlu0 %v2280_v43, %s2432_s24  ;;  %2296 = vrot.lane.b32.xlu2 %v2280_v43, %s2444_s10 }
  0xac   :  { %2291 = vrot.lane.b32.xlu1 %v2265_v40, %s2435_s27 }
  0xb3   :  { %2321 = vrot.lane.b32.xlu0 %v2280_v43, %s2431_s0  ;;  %2306 = vrot.lane.b32.xlu2 %v2265_v40, %s2438_s30 }
  0xb4   :  { %2301 = vrot.lane.b32.xlu1 %v2265_v40, %s2437_s29 }
  0xbb   :  { %220 = vrot.lane.b32.xlu0 %v2513_v6, %s2445_s11  ;;  %257 = vrot.lane.b32.xlu2 %v2598_v42, %s2430_s23 }
  0xbc   :  { %2316 = vrot.lane.b32.xlu1 %v2265_v40, %s2440_s6 }
  0xc3   :  { %136 = vrot.lane.b32.xlu0 %v2598_v42, %s2438_s30  ;;  %268 = vrot.lane.b32.xlu2 %v2513_v6, %s2446_s12  ;;  %v166_v6 = vsel %vm165_vm6, %v2248_v61, %v2249_v58 }
  0xc4   :  { %2326 = vrot.lane.b32.xlu1 %v2280_v43, %s2433_s25  ;;  %v288_v22 = vrot.slane %v166_v6, 4 }
  0xcb   :  { %112 = vrot.lane.b32.xlu2 %v2598_v42, %s2437_s29 }
  0xcc   :  { %2331 = vrot.lane.b32.xlu1 %v2280_v43, %s2435_s27 }
  0xd4   :  { %83 = vrot.lane.b32.xlu1 %v2598_v42, %s2440_s6 }
  0xed   :  { %v2632_v47 = vpop.permute.xlu2 %150 }
  0xf5   :  { %v2636_v49 = vpop.permute.xlu2 %2266 }
  0xf6   :  { %v2269_v56 = vunpack.i.h.bf16 %v2636_v49  ;;  %v2268_v57 = vunpack.i.l.bf16 %v2636_v49 }
  0xf8   :  { %v239_v63 = vsel %vm237_vm2, %v2234_v18, %v2268_v57  ;;  %v240_v0 = vsel %vm237_vm2, %v2268_v57, %v2269_v56 }
  0xf9   :  { %v314_v17 = vrot.slane %v239_v63, 4  ;;  %v315_v18 = vrot.slane %v240_v0, 4  ;;  %v172_v0 = vsel %vm165_vm6, %v2632_v47, %v2248_v61 }
  0xfd   :  { %v2642_v52 = vpop.permute.xlu2 %2276 }
  0xfe   :  { %v2279_v59 = vunpack.i.h.bf16 %v2642_v52  ;;  %v2278_v60 = vunpack.i.l.bf16 %v2642_v52 }
 0x100   :  { %v211_v10 = vsel %vm209_vm4, %v2244_v27, %v2278_v60  ;;  %v212_v11 = vsel %vm209_vm4, %v2278_v60, %v2279_v59  ;;  %v2263_v27 = vunpack.i.l.bf16 %v2638_v50 }
 0x101   :  { %v345_v23 = vsel %vm325_vm1, %v211_v10, %v314_v17  ;;  %v346_v24 = vsel %vm325_vm1, %v212_v11, %v315_v18  ;;  %v2725_v11 = vld [vmem:[%s3619_s2] sm:$0xff] }
 0x102   :  { %v86_v63 = vsel %vm85_vm9, %v2263_v27, %v2264_v26 }
 0x103   :  { %v327_v47 = vsel %vm325_vm1, %v86_v63, %v275_v34 }
 0x105   :  { %v2644_v53 = vpop.permute.xlu2 %2296  ;;  %v2646_v54 = vpop.permute.xlu0 %259 }
 0x106   :  { %v2648_v55 = vpop.permute.xlu1 %255  ;;  %v2299_v40 = vunpack.i.h.bf16 %v2644_v53  ;;  %v2298_v43 = vunpack.i.l.bf16 %v2644_v53 }
 0x108   :  { %v69_v61 = vsel %vm68_vm10, %v2298_v43, %v2299_v40 }
 0x10d   :  { %v2669_v8 = vpop.permute.xlu2 %2306  ;;  %v254_v9 = vpop.permute.xlu0 %253 }
 0x10e   :  { %v2677_v12 = vpop.permute.xlu1 %2271  ;;  %v263_v13 = vsel %vm261_vm0, %v2537_v14, %v254_v9  ;;  %v264_v15 = vsel %vm261_vm0, %v254_v9, %v2648_v55  ;;  %v139_v14 = vsel %vm138_vm7, %v2258_v3, %v2259_v2  ;;  %v2309_v49 = vunpack.i.h.bf16 %v2669_v8 }
 0x10f   :  { %v2274_v19 = vunpack.i.h.bf16 %v2677_v12  ;;  %v2273_v21 = vunpack.i.l.bf16 %v2677_v12  ;;  %2152 = vmatpush.msk.msra.mxu1 %vm325_vm1, %v263_v13  ;;  %2154 = vmatpush.msk.msra.mxu2 %vm325_vm1, %v264_v15  ;;  %v333_v32 = vsel %vm325_vm1, %v139_v14, %v288_v22  ;;  %v287_v15 = vrot.slane %v172_v0, 4 }
 0x111   :  { %400 = vmatpush.msra.mxu1 %v345_v23  ;;  %420 = vmatpush.msra.mxu2 %v346_v24  ;;  %v187_v28 = vsel %vm185_vm3, %v2239_v20, %v2273_v21  ;;  %v188_v29 = vsel %vm185_vm3, %v2273_v21, %v2274_v19  ;;  %v96_v23 = vsel %vm85_vm9, %v69_v61, %v2263_v27 }
 0x112   :  { %v301_v30 = vrot.slane %v187_v28, 4  ;;  %v302_v31 = vrot.slane %v188_v29, 4  ;;  %v2308_v29 = vunpack.i.l.bf16 %v2669_v8 }
 0x114   :  { %v339_v57 = vsel %vm325_vm1, %v2516_v7, %v301_v30  ;;  %v340_v16 = vsel %vm325_vm1, %v2586_v39, %v302_v31  ;;  %v140_v31 = vsel %vm138_vm7, %v2259_v2, %v2308_v29 }
 0x115   :  { %v258_v20 = vpop.permute.xlu2 %257  ;;  %401 = vmatpush.msra.mxu1 %v339_v57  ;;  %421 = vmatpush.msra.mxu2 %v340_v16  ;;  %v2282_v60 = vpop.permute.xlu0 %2281 }
 0x116   :  { %v2284_v53 = vunpack.i.h.bf16 %v2282_v60  ;;  %v2283_v6 = vunpack.i.l.bf16 %v2282_v60  ;;  %v2287_v9 = vpop.permute.xlu1 %2286  ;;  %v265_v7 = vsel %vm261_vm0, %v2648_v55, %v258_v20  ;;  %v266_v14 = vsel %vm261_vm0, %v258_v20, %v2646_v54 }
 0x117   :  { %v2289_v39 = vunpack.i.h.bf16 %v2287_v9  ;;  %v2288_v10 = vunpack.i.l.bf16 %v2287_v9  ;;  %402 = vmatpush.msra.mxu1 %v333_v32  ;;  %2156 = vmatpush.msk.msra.mxu3 %vm325_vm1, %v265_v7 }
 0x118   :  { %v102_v13 = vsel %vm101_vm11, %v2283_v6, %v2284_v53 }
 0x119   :  { %403 = vmatpush.msra.mxu1 %v327_v47  ;;  %v126_v55 = vsel %vm125_vm12, %v2288_v10, %v2289_v39  ;;  %v120_v17 = vsel %vm114_vm8, %v102_v13, %v2253_v1 }
 0x11a   :  { %v149_v18 = vsel %vm138_vm7, %v126_v55, %v2258_v3  ;;  %v274_v21 = vrot.slane %v120_v17, 4  ;;  %2153 = vmatmul.msk.f32.vlgmr.msra.gmra.mxu1 %vm351_vm13, %v2725_v11 }
 0x11b   :  { %v332_v22 = vsel %vm325_vm1, %v149_v18, %v287_v15 }
 0x11c   :  { %382 = vmatpush.msra.mxu0 %v332_v22  ;;  %v326_v24 = vsel %vm325_vm1, %v96_v23, %v274_v21 }
 0x11d   :  { %v269_v1 = vpop.permute.xlu2 %268  ;;  %v2312_v25 = vpop.permute.xlu0 %2311 }
 0x11e   :  { %v2744_v28 = vpop.permute.xlu1 %2291  ;;  %383 = vmatpush.msra.mxu0 %v326_v24  ;;  %v272_v3 = vsel %vm271_vm14, %v266_v14, %v269_v1  ;;  %2160 = vmatpush.msk.msrb.mxu1 %vm325_vm1, %v269_v1  ;;  %v2314_v2 = vunpack.i.h.bf16 %v2312_v25  ;;  %v2313_v60 = vunpack.i.l.bf16 %v2312_v25 }
 0x11f   :  { %v2293_v27 = vunpack.i.l.bf16 %v2744_v28  ;;  %2151 = vmatmul.msk.f32.vlgmr.msra.gmra.mxu0 %vm351_vm13, %v2725_v11  ;;  %v2294_v39 = vunpack.i.h.bf16 %v2744_v28 }
 0x120   :  { %2158 = vmatpush.msk.msrb.mxu0 %vm325_vm1, %v272_v3  ;;  %v242_v7 = vsel %vm237_vm2, %v2313_v60, %v2314_v2 }
 0x121   :  { %v167_v54 = vsel %vm165_vm6, %v2249_v58, %v2293_v27  ;;  %v318_v58 = vrot.slane %v2628_v45, 4  ;;  %v248_v50 = vsel %vm3624_vm5, %v242_v7, %v2628_v45  ;;  %v168_v15 = vsel %vm165_vm6, %v2293_v27, %v2294_v39 }
 0x122   :  { %v289_v30 = vrot.slane %v167_v54, 4  ;;  %v317_v17 = vrot.slane %v248_v50, 4  ;;  %v290_v24 = vrot.slane %v168_v15, 4  ;;  %vm495_vm5 = vcmask 64512  }
 0x124   :  { %v334_v32 = vsel %vm325_vm1, %v140_v31, %v289_v30 }
 0x125   :  { %v2322_v34 = vpop.permute.xlu0 %2321  ;;  %422 = vmatpush.msra.mxu2 %v334_v32 }
 0x126   :  { %v2324_v40 = vunpack.i.h.bf16 %v2322_v34  ;;  %v2762_v43 = vpop.permute.xlu1 %2301  ;;  %v2323_v9 = vunpack.i.l.bf16 %v2322_v34  ;;  %v113_v34 = vpop.permute.xlu2 %112 }
 0x127   :  { %v2303_v57 = vunpack.i.l.bf16 %v2762_v43  ;;  %v2304_v61 = vunpack.i.h.bf16 %v2762_v43 }
 0x128   :  { %v196_v46 = vsel %vm3623_vm15, %v2324_v40, %v2640_v51  ;;  %vm223_vm15 = vcmask 973824   ;;  %v190_v47 = vsel %vm185_vm3, %v2323_v9, %v2324_v40 }
 0x129   :  { %v305_v16 = vrot.slane %v196_v46, 4  ;;  %v116_v48 = vsel %vm114_vm8, %v2254_v62, %v2303_v57  ;;  %v304_v21 = vrot.slane %v190_v47, 4  ;;  %v117_v1 = vsel %vm114_vm8, %v2303_v57, %v2304_v61 }
 0x12a   :  { %v276_v6 = vrot.slane %v116_v48, 4  ;;  %v277_v54 = vrot.slane %v117_v1, 4  ;;  %v118_v57 = vsel %vm114_vm8, %v2304_v61, %v113_v34 }
 0x12b   :  { %v343_v51 = vsel %vm325_vm1, %v2569_v35, %v305_v16  ;;  %v241_v35 = vsel %vm237_vm2, %v2269_v56, %v2313_v60  ;;  %v342_v52 = vsel %vm325_vm1, %v2598_v42, %v304_v21  ;;  %v279_v16 = vrot.slane %v113_v34, 4 }
 0x12c   :  { %v316_v56 = vrot.slane %v241_v35, 4  ;;  %v278_v48 = vrot.slane %v118_v57, 4 }
 0x12d   :  { %v221_v20 = vpop.permute.xlu0 %220 }
 0x12e   :  { %v2771_v63 = vpop.permute.xlu1 %2316  ;;  %v349_v0 = vsel %vm325_vm1, %v221_v20, %v318_v58 }
 0x12f   :  { %v2318_v53 = vunpack.i.l.bf16 %v2771_v63  ;;  %480 = vmatpush.msrb.mxu1 %v349_v0  ;;  %v2319_v45 = vunpack.i.h.bf16 %v2771_v63 }
 0x131   :  { %481 = vmatpush.msrb.mxu1 %v343_v51  ;;  %v87_v44 = vsel %vm85_vm9, %v2264_v26, %v2318_v53  ;;  %v189_v26 = vsel %vm185_vm3, %v2274_v19, %v2323_v9  ;;  %v88_v28 = vsel %vm85_vm9, %v2318_v53, %v2319_v45  ;;  %v494_v51 = vld [vmem:[%s3620_s3] sm:$0xf] }
 0x132   :  { %v328_v62 = vsel %vm325_vm1, %v87_v44, %v276_v6  ;;  %v303_v18 = vrot.slane %v189_v26, 4 }
 0x133   :  { %423 = vmatpush.msra.mxu2 %v328_v62 }
 0x134   :  { %2155 = vmatmul.msk.f32.vlgmr.msra.gmra.mxu2 %vm351_vm13, %v2725_v11  ;;  %v341_v25 = vsel %vm325_vm1, %v2574_v37, %v303_v18  ;;  %v329_v37 = vsel %vm325_vm1, %v88_v28, %v277_v54 }
 0x135   :  { %v137_v32 = vpop.permute.xlu0 %136 }
 0x136   :  { %v2327_v10 = vpop.permute.xlu1 %2326  ;;  %v142_v43 = vsel %vm138_vm7, %v2309_v49, %v137_v32 }
 0x137   :  { %v2329_v13 = vunpack.i.h.bf16 %v2327_v10  ;;  %v2328_v55 = vunpack.i.l.bf16 %v2327_v10  ;;  %v2843_v10 = vld [vmem:[%s3621_s1] sm:$0x3f] }
 0x138   :  { %v621_v47 = vperm.slane %v2843_v10, 1 }
 0x139   :  { %v213_v12 = vsel %vm209_vm4, %v2279_v59, %v2328_v55  ;;  %v214_v19 = vsel %vm209_vm4, %v2328_v55, %v2329_v13  ;;  %v141_v59 = vsel %vm138_vm7, %v2308_v29, %v2309_v49  ;;  %v620_v55 = vperm.slane %v2843_v10, 0 }
 0x13a   :  { %v347_v22 = vsel %vm325_vm1, %v213_v12, %v316_v56  ;;  %v224_v23 = vsel %vm223_vm15, %v214_v19, %v221_v20  ;;  %v335_v27 = vsel %vm325_vm1, %v141_v59, %v290_v24  ;;  %v624_v12 = vperm.slane %v2843_v10, 4 }
 0x13b   :  { %440 = vmatpush.msra.mxu3 %v347_v22  ;;  %v348_v14 = vsel %vm325_vm1, %v224_v23, %v317_v17  ;;  %v622_v24 = vperm.slane %v2843_v10, 2 }
 0x13c   :  { %460 = vmatpush.msrb.mxu0 %v348_v14 }
 0x13d   :  { %441 = vmatpush.msra.mxu3 %v341_v25 }
 0x13e   :  { %v2332_v3 = vpop.permute.xlu1 %2331  ;;  %461 = vmatpush.msrb.mxu0 %v342_v52 }
 0x13f   :  { %v2334_v30 = vunpack.i.h.bf16 %v2332_v3  ;;  %v2333_v31 = vunpack.i.l.bf16 %v2332_v3  ;;  %442 = vmatpush.msra.mxu3 %v335_v27 }
 0x141   :  { %443 = vmatpush.msra.mxu3 %v329_v37  ;;  %v169_v42 = vsel %vm165_vm6, %v2294_v39, %v2333_v31  ;;  %v170_v8 = vsel %vm165_vm6, %v2333_v31, %v2334_v30 }
 0x142   :  { %2157 = vmatmul.msk.f32.vlgmr.msra.gmra.mxu3 %vm351_vm13, %v2725_v11  ;;  %v291_v29 = vrot.slane %v169_v42, 4  ;;  %v292_v40 = vrot.slane %v170_v8, 4 }
 0x144   :  { %v336_v46 = vsel %vm325_vm1, %v142_v43, %v291_v29  ;;  %v337_v58 = vsel %vm325_vm1, %v137_v32, %v292_v40 }
 0x145   :  { %462 = vmatpush.msrb.mxu0 %v336_v46  ;;  %482 = vmatpush.msrb.mxu1 %v337_v58 }
 0x146   :  { %v84_v20 = vpop.permute.xlu1 %83 }
 0x147   :  { %v89_v2 = vsel %vm85_vm9, %v2319_v45, %v84_v20  ;;  %v331_v60 = vsel %vm325_vm1, %v84_v20, %v279_v16 }
 0x148   :  { %483 = vmatpush.msrb.mxu1 %v331_v60  ;;  %v330_v63 = vsel %vm325_vm1, %v89_v2, %v278_v48 }
 0x149   :  { %463 = vmatpush.msrb.mxu0 %v330_v63  ;;  %2161 = vmatmul.msk.f32.vlgmr.msrb.gmra.mxu1 %vm351_vm13, %v2725_v11 }
 0x14a   :  { %2159 = vmatmul.msk.f32.vlgmr.msrb.gmra.mxu0 %vm351_vm13, %v2725_v11 }
 0x197   :  { %v405_v0 = vpop.f32.mrf.mxu1 }
 0x198   :  { %v489_v53 = vmax.f32 %v405_v0, 0.0 }
 0x19a   :  { %534 = vmatpush.msrb.mxu3 %v489_v53 }
 0x19b   :  { %2163 = vmatmul.msk.f32.vlgmr.msrb.gmra.mxu3 %vm495_vm5, %v494_v51 }
 0x19c   :  { %v385_v6 = vpop.f32.mrf.mxu0 }
 0x19d   :  { %v488_v9 = vmax.f32 %v385_v6, 0.0 }
 0x19f   :  { %514 = vmatpush.msrb.mxu2 %v488_v9 }
 0x1a0   :  { %2162 = vmatmul.msk.f32.vlgmr.msrb.gmra.mxu2 %vm495_vm5, %v494_v51 }
 0x1b7   :  { %v425_v44 = vpop.f32.mrf.mxu2 }
 0x1b8   :  { %v490_v62 = vmax.f32 %v425_v44, 0.0 }
 0x1ba   :  { %554 = vmatpush.msra.mxu2 %v490_v62 }
 0x1bb   :  { %2164 = vmatmul.msk.f32.vlgmr.msra.gmra.mxu2 %vm495_vm5, %v494_v51 }
 0x1c5   :  { %v445_v11 = vpop.f32.mrf.mxu3 }
 0x1c6   :  { %v491_v7 = vmax.f32 %v445_v11, 0.0  ;;  %v485_v39 = vpop.f32.mrf.mxu1 }
 0x1c7   :  { %v493_v35 = vmax.f32 %v485_v39, 0.0  ;;  %v465_v50 = vpop.f32.mrf.mxu0 }
 0x1c8   :  { %v492_v26 = vmax.f32 %v465_v50, 0.0  ;;  %574 = vmatpush.msra.mxu3 %v491_v7 }
 0x1c9   :  { %2165 = vmatmul.msk.f32.vlgmr.msra.gmra.mxu3 %vm495_vm5, %v494_v51  ;;  %614 = vmatpush.msra.mxu1 %v493_v35 }
 0x1ca   :  { %594 = vmatpush.msra.mxu0 %v492_v26  ;;  %2167 = vmatmul.msk.f32.vlgmr.msra.gmra.mxu1 %vm495_vm5, %v494_v51 }
 0x1cb   :  { %2166 = vmatmul.msk.f32.vlgmr.msra.gmra.mxu0 %vm495_vm5, %v494_v51 }
 0x21e   :  { %v536_v61 = vpop.f32.mrf.mxu3 }
 0x21f   :  { %v633_v13 = vmul.f32 %v621_v47, %v536_v61 }
 0x221   :  { %v2850_v15 = vadd.f32 %v633_v13, %v2510_v5 }
 0x223   :  { %v2853_v49 = vmax.f32 %v2850_v15, 0.0  ;;  %v516_v56 = vpop.f32.mrf.mxu2 }
 0x224   :  { %v632_v17 = vmul.f32 %v620_v55, %v516_v56 }
 0x225   :  { %826 = vrot.lane.b32.xlu1 %v2853_v49, %s2430_s23 }
 0x226   :  { %v2860_v18 = vadd.f32 %v632_v17, %v2508_v4  ;;  %v625_v4 = vperm.slane %v2843_v10, 5 }
 0x228   :  { %v2863_v45 = vmax.f32 %v2860_v18, 0.0 }
 0x22a   :  { %820 = vrot.lane.b32.xlu2 %v2863_v45, %s2439_s5  ;;  %824 = vrot.lane.b32.xlu0 %v2863_v45, %s2430_s23  ;;  %v2360_v5 = vpack.i.bf16 %v2853_v49, %v2863_v45  ;;  %s2457_s5 = smov 4  }
 0x22d   :  { %2361 = vrot.lane.b32.xlu1 %v2360_v5, %s2438_s30 }
 0x232   :  { %798 = vrot.lane.b32.xlu2 %v2863_v45, %s2445_s11  ;;  %842 = vrot.lane.b32.xlu0 %v2863_v45, %s2446_s12  ;;  %s2463_s11 = smov 60   ;;  %s2467_s12 = smov 64  }
 0x235   :  { %2366 = vrot.lane.b32.xlu1 %v2360_v5, %s2440_s6 }
 0x23a   :  { %772 = vrot.lane.b32.xlu0 %v2863_v45, %s2436_s28  ;;  %2336 = vrot.lane.b32.xlu2 %v2360_v5, %s2432_s24  ;;  %s2454_s28 = smov 58  }
 0x23e   :  { %v556_v1 = vpop.f32.mrf.mxu2 }
 0x23f   :  { %v634_v28 = vmul.f32 %v622_v24, %v556_v1 }
 0x242   :  { %2341 = vrot.lane.b32.xlu2 %v2360_v5, %s2431_s0 }
 0x247   :  { %v616_v19 = vpop.f32.mrf.mxu1 }
 0x248   :  { %v637_v21 = vmul.f32 %v625_v4, %v616_v19  ;;  %v596_v22 = vpop.f32.mrf.mxu0 }
 0x249   :  { %v636_v23 = vmul.f32 %v624_v12, %v596_v22 }
 0x24a   :  { %v2889_v14 = vadd.f32 %v637_v21, %v2566_v33  ;;  %2351 = vrot.lane.b32.xlu2 %v2360_v5, %s2435_s27  ;;  %v2908_v33 = vadd.f32 %v634_v28, %v2581_v38  ;;  %v623_v38 = vperm.slane %v2843_v10, 3 }
 0x24b   :  { %v2893_v25 = vadd.f32 %v636_v23, %v2591_v41 }
 0x24c   :  { %v2896_v52 = vmax.f32 %v2889_v14, 0.0  ;;  %v2915_v3 = vmax.f32 %v2908_v33, 0.0  ;;  %v576_v54 = vpop.f32.mrf.mxu3 }
 0x24d   :  { %v2899_v59 = vmax.f32 %v2893_v25, 0.0  ;;  %v635_v30 = vmul.f32 %v623_v38, %v576_v54 }
 0x24e   :  { %732 = vrot.lane.b32.xlu1 %v2896_v52, %s2441_s7  ;;  %v2400_v37 = vpack.i.bf16 %v2915_v3, %v2896_v52  ;;  %s2459_s7 = smov 40  }
 0x24f   :  { %832 = vrot.lane.b32.xlu0 %v2899_v59, %s2430_s23  ;;  %v2375_v41 = vpack.i.bf16 %v2896_v52, %v2899_v59  ;;  %v2385_v27 = vpack.i.bf16 %v2899_v59, %v2915_v3  ;;  %v2935_v31 = vadd.f32 %v635_v30, %v2571_v36 }
 0x251   :  { %v2940_v32 = vmax.f32 %v2935_v31, 0.0 }
 0x252   :  { %786 = vrot.lane.b32.xlu2 %v2896_v52, %s2433_s25 }
 0x253   :  { %v2415_v42 = vpack.i.bf16 %v2899_v59, %v2940_v32  ;;  %v2405_v8 = vpack.i.bf16 %v2940_v32, %v2896_v52 }
 0x256   :  { %2376 = vrot.lane.b32.xlu1 %v2375_v41, %s2443_s9  ;;  %s2461_s9 = smov 114  }
 0x257   :  { %2346 = vrot.lane.b32.xlu0 %v2360_v5, %s2433_s25 }
 0x25a   :  { %2386 = vrot.lane.b32.xlu2 %v2385_v27, %s2432_s24 }
 0x25e   :  { %834 = vrot.lane.b32.xlu1 %v2896_v52, %s2430_s23 }
 0x25f   :  { %2356 = vrot.lane.b32.xlu0 %v2360_v5, %s2437_s29 }
 0x262   :  { %828 = vrot.lane.b32.xlu2 %v2915_v3, %s2430_s23 }
 0x266   :  { %764 = vrot.lane.b32.xlu1 %v2896_v52, %s2431_s0 }
 0x267   :  { %2371 = vrot.lane.b32.xlu0 %v2375_v41, %s2442_s8  ;;  %s2460_s8 = smov 96  }
 0x26a   :  { %2396 = vrot.lane.b32.xlu2 %v2385_v27, %s2433_s25 }
 0x26e   :  { %2391 = vrot.lane.b32.xlu1 %v2385_v27, %s2431_s0 }
 0x26f   :  { %2381 = vrot.lane.b32.xlu0 %v2375_v41, %s2444_s10  ;;  %s2462_s10 = smov 78  }
 0x272   :  { %2401 = vrot.lane.b32.xlu2 %v2400_v37, %s2435_s27 }
 0x276   :  { %2416 = vrot.lane.b32.xlu1 %v2415_v42, %s2437_s29 }
 0x277   :  { %2406 = vrot.lane.b32.xlu0 %v2405_v8, %s2432_s24 }
 0x27a   :  { %2421 = vrot.lane.b32.xlu2 %v2415_v42, %s2438_s30 }
 0x27e   :  { %2426 = vrot.lane.b32.xlu1 %v2415_v42, %s2440_s6 }
 0x27f   :  { %2411 = vrot.lane.b32.xlu0 %v2415_v42, %s2435_s27  ;;  %s2453_s27 = smov 2  }
 0x282   :  { %782 = vrot.lane.b32.xlu2 %v2940_v32, %s2433_s25  ;;  %s2451_s25 = smov 56  }
 0x284   :  { %v2956_v36 = vpop.permute.xlu2 %820 }
 0x286   :  { %760 = vrot.lane.b32.xlu1 %v2940_v32, %s2431_s0 }
 0x287   :  { %830 = vrot.lane.b32.xlu0 %v2940_v32, %s2430_s23  ;;  %s2450_s23 = smov 38  }
 0x28a   :  { %666 = vrot.lane.b32.xlu2 %v2915_v3, %s2440_s6  ;;  %s2458_s6 = smov 22  }
 0x28c   :  { %v2964_v34 = vpop.permute.xlu2 %798 }
 0x28e   :  { %715 = vrot.lane.b32.xlu1 %v2915_v3, %s2438_s30  ;;  %s2456_s30 = smov 94  }
 0x28f   :  { %693 = vrot.lane.b32.xlu0 %v2915_v3, %s2437_s29  ;;  %s2455_s29 = smov 76  }
 0x294   :  { %v2337_v29 = vpop.permute.xlu2 %2336 }
 0x295   :  { %v2339_v9 = vunpack.i.h.bf16 %v2337_v29  ;;  %v2338_v44 = vunpack.i.l.bf16 %v2337_v29 }
 0x297   :  { %v827_v40 = vpop.permute.xlu1 %826  ;;  %v814_v26 = vsel %vm237_vm2, %v2338_v44, %v2339_v9 }
 0x298   :  { %v886_v41 = vrot.slane %v814_v26, 4 }
 0x29c   :  { %v825_v43 = vpop.permute.xlu0 %824  ;;  %v2970_v57 = vpop.permute.xlu2 %2341 }
 0x29d   :  { %v836_v46 = vsel %vm261_vm0, %v825_v43, %v827_v40  ;;  %v2344_v62 = vunpack.i.h.bf16 %v2970_v57  ;;  %v2343_v11 = vunpack.i.l.bf16 %v2970_v57 }
 0x29e   :  { %2169 = vmatpush.msk.msrb.mxu2 %vm325_vm1, %v836_v46 }
 0x29f   :  { %v2976_v20 = vpop.permute.xlu1 %2361  ;;  %v766_v61 = vsel %vm185_vm3, %v2343_v11, %v2344_v62 }
 0x2a0   :  { %v873_v54 = vrot.slane %v766_v61, 4  ;;  %v2363_v37 = vunpack.i.l.bf16 %v2976_v20 }
 0x2a4   :  { %v2974_v58 = vpop.permute.xlu2 %2351  ;;  %v2978_v48 = vpop.permute.xlu0 %842 }
 0x2a5   :  { %v2353_v22 = vunpack.i.l.bf16 %v2974_v58  ;;  %v2354_v61 = vunpack.i.h.bf16 %v2974_v58 }
 0x2a7   :  { %v2982_v60 = vpop.permute.xlu1 %2366 }
 0x2ac   :  { %v787_v16 = vpop.permute.xlu2 %786  ;;  %v2984_v63 = vpop.permute.xlu0 %772 }
 0x2b4   :  { %v2980_v2 = vpop.permute.xlu2 %2386 }
 0x2b5   :  { %v2388_v7 = vunpack.i.l.bf16 %v2980_v2 }
 0x2b7   :  { %v815_v13 = vsel %vm237_vm2, %v2339_v9, %v2388_v7 }
 0x2b8   :  { %v887_v27 = vrot.slane %v815_v13, 4 }
 0x2bc   :  { %v2986_v0 = vpop.permute.xlu2 %828 }
 0x2bd   :  { %v837_v53 = vsel %vm261_vm0, %v827_v40, %v2986_v0 }
 0x2be   :  { %2171 = vmatpush.msk.msrb.mxu3 %vm325_vm1, %v837_v53 }
 0x2c0   :  { %v733_v51 = vpop.permute.xlu1 %732 }
 0x2c1   :  { %v2991_v6 = vpop.permute.xlu0 %832  ;;  %v753_v42 = vsel %vm165_vm6, %v733_v51, %v2353_v22 }
 0x2c2   :  { %v860_v46 = vrot.slane %v753_v42, 4 }
 0x2c4   :  { %v2996_v39 = vpop.permute.xlu2 %2396 }
 0x2c5   :  { %v2399_v35 = vunpack.i.h.bf16 %v2996_v39  ;;  %v2398_v23 = vunpack.i.l.bf16 %v2996_v39 }
 0x2c7   :  { %v792_v50 = vsel %vm209_vm4, %v2399_v35, %v787_v16  ;;  %v910_v16 = vsel %vm325_vm1, %v2863_v45, %v873_v54 }
 0x2c8   :  { %v2377_v56 = vpop.permute.xlu1 %2376  ;;  %v3009_v17 = vsel %vm223_vm15, %v792_v50, %v2964_v34  ;;  %vm1641_vm15 = vcmask 654336  }
 0x2c9   :  { %v2379_v5 = vunpack.i.h.bf16 %v2377_v56  ;;  %v2378_v19 = vunpack.i.l.bf16 %v2377_v56  ;;  %v2347_v21 = vpop.permute.xlu0 %2346 }
 0x2ca   :  { %v2349_v1 = vunpack.i.h.bf16 %v2347_v21  ;;  %v2348_v28 = vunpack.i.l.bf16 %v2347_v21  ;;  %v747_v21 = vsel %vm165_vm6, %v2353_v22, %v2354_v61 }
 0x2cb   :  { %v709_v30 = vsel %vm125_vm12, %v2378_v19, %v2379_v5  ;;  %v2364_v19 = vunpack.i.h.bf16 %v2976_v20  ;;  %vm1635_vm12 = vcmask 261120  }
 0x2cc   :  { %v788_v8 = vsel %vm209_vm4, %v2348_v28, %v2349_v1  ;;  %v789_v29 = vsel %vm209_vm4, %v2349_v1, %v2398_v23  ;;  %v731_v57 = vsel %vm138_vm7, %v709_v30, %v2363_v37  ;;  %v2368_v30 = vunpack.i.l.bf16 %v2982_v60  ;;  %v3041_v42 = vpop.permute.xlu2 %2401 }
 0x2cd   :  { %v916_v40 = vsel %vm325_vm1, %v788_v8, %v886_v41  ;;  %v917_v43 = vsel %vm325_vm1, %v789_v29, %v887_v27  ;;  %v904_v9 = vsel %vm325_vm1, %v731_v57, %v860_v46  ;;  %v861_v57 = vrot.slane %v747_v21, 4 }
 0x2ce   :  { %952 = vmatpush.msrb.mxu2 %v916_v40  ;;  %972 = vmatpush.msrb.mxu3 %v917_v43  ;;  %v2369_v46 = vunpack.i.h.bf16 %v2982_v60 }
 0x2d0   :  { %953 = vmatpush.msrb.mxu2 %v910_v16  ;;  %v835_v53 = vpop.permute.xlu1 %834 }
 0x2d1   :  { %v3025_v51 = vpop.permute.xlu0 %2356  ;;  %v840_v16 = vsel %vm261_vm0, %v2991_v6, %v835_v53 }
 0x2d2   :  { %954 = vmatpush.msrb.mxu2 %v904_v9  ;;  %v2359_v56 = vunpack.i.h.bf16 %v3025_v51  ;;  %v2358_v5 = vunpack.i.l.bf16 %v3025_v51  ;;  %v845_v53 = vsel %vm271_vm14, %v840_v16, %v2978_v48  ;;  %vm1639_vm14 = vcmask 523264  }
 0x2d4   :  { %v699_v8 = vsel %vm114_vm8, %v2358_v5, %v2359_v56 }
 0x2d8   :  { %v765_v44 = vpop.permute.xlu1 %764 }
 0x2d9   :  { %v2372_v11 = vpop.permute.xlu0 %2371 }
 0x2da   :  { %v2374_v50 = vunpack.i.h.bf16 %v2372_v11  ;;  %v2373_v26 = vunpack.i.l.bf16 %v2372_v11  ;;  %v3057_v11 = vld [vmem:[%s3619_s2 + $0x8] sm:$0xff] }
 0x2dc   :  { %v687_v13 = vsel %vm101_vm11, %v2373_v26, %v2374_v50  ;;  %vm3626_vm11 = vcmask 965632  }
 0x2dd   :  { %v704_v41 = vsel %vm114_vm8, %v687_v13, %v2358_v5  ;;  %v848_v5 = vrot.slane %v699_v8, 4 }
 0x2de   :  { %v847_v40 = vrot.slane %v704_v41, 4 }
 0x2e0   :  { %v3032_v45 = vpop.permute.xlu1 %2391 }
 0x2e1   :  { %v2393_v1 = vunpack.i.l.bf16 %v3032_v45  ;;  %v2382_v28 = vpop.permute.xlu0 %2381  ;;  %v2394_v50 = vunpack.i.h.bf16 %v3032_v45 }
 0x2e2   :  { %v2384_v27 = vunpack.i.h.bf16 %v2382_v28  ;;  %v2383_v54 = vunpack.i.l.bf16 %v2382_v28  ;;  %v891_v28 = vrot.slane %v2956_v36, 4 }
 0x2e3   :  { %v767_v29 = vsel %vm185_vm3, %v2344_v62, %v2393_v1  ;;  %v721_v62 = vsel %vm138_vm7, %v2363_v37, %v2364_v19  ;;  %v770_v8 = vsel %vm185_vm3, %v2394_v50, %v765_v44 }
 0x2e4   :  { %v656_v22 = vsel %vm68_vm10, %v2383_v54, %v2384_v27  ;;  %v874_v43 = vrot.slane %v767_v29, 4  ;;  %v905_v37 = vsel %vm325_vm1, %v721_v62, %v861_v57  ;;  %vm3625_vm10 = vcmask 56320  }
 0x2e5   :  { %v682_v9 = vsel %vm85_vm9, %v656_v22, %v2368_v30  ;;  %v775_v41 = vsel %vm3625_vm10, %v765_v44, %v2984_v63  ;;  %v672_v27 = vsel %vm85_vm9, %v2368_v30, %v2369_v46  ;;  %v2389_v54 = vunpack.i.h.bf16 %v2980_v2 }
 0x2e6   :  { %v898_v26 = vsel %vm325_vm1, %v682_v9, %v847_v40  ;;  %v911_v13 = vsel %vm325_vm1, %v2853_v49, %v874_v43  ;;  %v899_v22 = vsel %vm325_vm1, %v672_v27, %v848_v5  ;;  %v878_v40 = vrot.slane %v775_v41, 4  ;;  %v3088_v43 = vpop.permute.xlu2 %2421 }
 0x2e7   :  { %955 = vmatpush.msrb.mxu2 %v898_v26  ;;  %973 = vmatpush.msrb.mxu3 %v911_v13  ;;  %v877_v57 = vrot.slane %v770_v8, 4  ;;  %v921_v44 = vsel %vm325_vm1, %v2964_v34, %v891_v28  ;;  %v2403_v9 = vunpack.i.l.bf16 %v3041_v42  ;;  %v2424_v5 = vunpack.i.h.bf16 %v3088_v43 }
 0x2e8   :  { %v3068_v21 = vpop.permute.xlu1 %2416  ;;  %2170 = vmatmul.msk.f32.vlgmr.msrb.gmra.mxu2 %vm351_vm13, %v3057_v11  ;;  %v2423_v34 = vunpack.i.l.bf16 %v3088_v43  ;;  %vm1645_vm10 = vcmask 916480  }
 0x2e9   :  { %2177 = vmatpush.msk.msra.mxu2 %vm325_vm1, %v845_v53  ;;  %v2407_v49 = vpop.permute.xlu0 %2406  ;;  %974 = vmatpush.msrb.mxu3 %v905_v37  ;;  %v2419_v62 = vunpack.i.h.bf16 %v3068_v21  ;;  %v2418_v26 = vunpack.i.l.bf16 %v3068_v21  ;;  %v914_v28 = vsel %vm325_vm1, %v2899_v59, %v877_v57 }
 0x2ea   :  { %v2408_v29 = vunpack.i.l.bf16 %v2407_v49  ;;  %v2409_v53 = vunpack.i.h.bf16 %v2407_v49 }
 0x2eb   :  { %975 = vmatpush.msrb.mxu3 %v899_v22 }
 0x2ec   :  { %v818_v63 = vsel %vm237_vm2, %v2389_v54, %v2408_v29  ;;  %2172 = vmatmul.msk.f32.vlgmr.msrb.gmra.mxu3 %vm351_vm13, %v3057_v11  ;;  %v816_v22 = vsel %vm237_vm2, %v2388_v7, %v2409_v53  ;;  %v817_v59 = vsel %vm237_vm2, %v2409_v53, %v2389_v54  ;;  %v2404_v7 = vunpack.i.h.bf16 %v3041_v42 }
 0x2ed   :  { %2179 = vmatpush.msk.msra.mxu3 %vm325_vm1, %v2978_v48  ;;  %v823_v30 = vsel %vm3626_vm11, %v818_v63, %v2956_v36  ;;  %v915_v48 = vsel %vm325_vm1, %v2896_v52, %v878_v40  ;;  %v889_v53 = vrot.slane %v817_v59, 4  ;;  %vm1233_vm2 = vcmask 15360  }
 0x2ee   :  { %v890_v16 = vrot.slane %v823_v30, 4  ;;  %v724_v30 = vsel %vm138_vm7, %v2423_v34, %v2424_v5  ;;  %v748_v39 = vsel %vm165_vm6, %v2354_v61, %v2404_v7 }
 0x2ef   :  { %1052 = vmatpush.msra.mxu3 %v921_v44  ;;  %v783_v44 = vpop.permute.xlu2 %782 }
 0x2f0   :  { %v3099_v13 = vpop.permute.xlu1 %2426  ;;  %v920_v36 = vsel %vm325_vm1, %v3009_v17, %v890_v16  ;;  %v702_v17 = vsel %vm114_vm8, %v2418_v26, %v2419_v62  ;;  %v852_v16 = vrot.slane %v2419_v62, 4  ;;  %v790_v45 = vsel %vm209_vm4, %v2398_v23, %v783_v44 }
 0x2f1   :  { %1053 = vmatpush.msra.mxu3 %v915_v48  ;;  %v2412_v37 = vpop.permute.xlu0 %2411  ;;  %1032 = vmatpush.msra.mxu2 %v920_v36  ;;  %v2429_v41 = vunpack.i.h.bf16 %v3099_v13  ;;  %v2428_v27 = vunpack.i.l.bf16 %v3099_v13  ;;  %v851_v48 = vrot.slane %v702_v17, 4  ;;  %v888_v36 = vrot.slane %v816_v22, 4 }
 0x2f2   :  { %v2414_v8 = vunpack.i.h.bf16 %v2412_v37  ;;  %v2413_v52 = vunpack.i.l.bf16 %v2412_v37  ;;  %v862_v22 = vrot.slane %v748_v39, 4 }
 0x2f3   :  { %1033 = vmatpush.msra.mxu2 %v914_v28  ;;  %v675_v57 = vsel %vm85_vm9, %v2428_v27, %v2429_v41 }
 0x2f4   :  { %v751_v29 = vsel %vm165_vm6, %v2414_v8, %v2403_v9  ;;  %v750_v49 = vsel %vm165_vm6, %v2413_v52, %v2414_v8  ;;  %v902_v8 = vsel %vm325_vm1, %v675_v57, %v851_v48 }
 0x2f5   :  { %v864_v40 = vrot.slane %v750_v49, 4  ;;  %v865_v63 = vrot.slane %v751_v29, 4 }
 0x2f7   :  { %v908_v9 = vsel %vm325_vm1, %v724_v30, %v864_v40  ;;  %v909_v2 = vsel %vm325_vm1, %v2424_v5, %v865_v63  ;;  %v903_v5 = vsel %vm325_vm1, %v2429_v41, %v852_v16  ;;  %v667_v40 = vpop.permute.xlu2 %666 }
 0x2f8   :  { %v761_v54 = vpop.permute.xlu1 %760  ;;  %1034 = vmatpush.msra.mxu2 %v908_v9  ;;  %1054 = vmatpush.msra.mxu3 %v909_v2  ;;  %v674_v51 = vsel %vm85_vm9, %v667_v40, %v2428_v27 }
 0x2f9   :  { %v768_v37 = vsel %vm185_vm3, %v2393_v1, %v761_v54  ;;  %v769_v62 = vsel %vm185_vm3, %v761_v54, %v2394_v50  ;;  %v831_v28 = vpop.permute.xlu0 %830  ;;  %v791_v1 = vsel %vm209_vm4, %v783_v44, %v2399_v35  ;;  %v749_v35 = vsel %vm165_vm6, %v2404_v7, %v2413_v52 }
 0x2fa   :  { %v875_v17 = vrot.slane %v768_v37, 4  ;;  %v876_v42 = vrot.slane %v769_v62, 4  ;;  %v838_v29 = vsel %vm261_vm0, %v2986_v0, %v831_v28  ;;  %v839_v49 = vsel %vm261_vm0, %v831_v28, %v2991_v6  ;;  %1035 = vmatpush.msra.mxu2 %v902_v8  ;;  %1055 = vmatpush.msra.mxu3 %v903_v5 }
 0x2fb   :  { %2173 = vmatpush.msk.msrb.mxu0 %vm325_vm1, %v838_v29  ;;  %2175 = vmatpush.msk.msrb.mxu1 %vm325_vm1, %v839_v49  ;;  %v918_v0 = vsel %vm325_vm1, %v790_v45, %v888_v36  ;;  %v919_v6 = vsel %vm325_vm1, %v791_v1, %v889_v53  ;;  %v863_v59 = vrot.slane %v749_v35, 4  ;;  %vm1270_vm0 = vcmask 1047556  }
 0x2fc   :  { %2178 = vmatmul.msk.f32.vlgmr.msra.gmra.mxu2 %vm351_vm13, %v3057_v11  ;;  %2180 = vmatmul.msk.f32.vlgmr.msra.gmra.mxu3 %vm351_vm13, %v3057_v11  ;;  %v912_v23 = vsel %vm325_vm1, %v2915_v3, %v875_v17  ;;  %v913_v50 = vsel %vm325_vm1, %v2940_v32, %v876_v42  ;;  %vm1259_vm3 = vcmask 31744   ;;  %vm1420_vm4 = vcmask 1046528  }
 0x2fd   :  { %992 = vmatpush.msrb.mxu0 %v918_v0  ;;  %1012 = vmatpush.msrb.mxu1 %v919_v6  ;;  %vm1688_vm6 = vcmask 621568  }
 0x2ff   :  { %993 = vmatpush.msrb.mxu0 %v912_v23  ;;  %1013 = vmatpush.msrb.mxu1 %v913_v50 }
 0x300   :  { %v716_v41 = vpop.permute.xlu1 %715 }
 0x301   :  { %v722_v58 = vsel %vm138_vm7, %v2364_v19, %v716_v41  ;;  %v723_v61 = vsel %vm138_vm7, %v716_v41, %v2423_v34  ;;  %v694_v52 = vpop.permute.xlu0 %693  ;;  %v673_v19 = vsel %vm85_vm9, %v2369_v46, %v667_v40  ;;  %v2181_v46 = vld [vmem:[%s3620_s3 + $0x4] sm:$0xf]  ;;  %s2447_s3 = smov 74   ;;  %vm1707_vm7 = vcmask 637952  }
 0x302   :  { %v700_v3 = vsel %vm114_vm8, %v2359_v56, %v694_v52  ;;  %v701_v32 = vsel %vm114_vm8, %v694_v52, %v2418_v26  ;;  %v906_v63 = vsel %vm325_vm1, %v722_v58, %v862_v22  ;;  %v907_v30 = vsel %vm325_vm1, %v723_v61, %v863_v59 }
 0x303   :  { %v849_v20 = vrot.slane %v700_v3, 4  ;;  %v850_v57 = vrot.slane %v701_v32, 4  ;;  %994 = vmatpush.msrb.mxu0 %v906_v63  ;;  %1014 = vmatpush.msrb.mxu1 %v907_v30  ;;  %vm1669_vm8 = vcmask 605184   ;;  %vm1633_vm9 = vcmask 130048  }
 0x305   :  { %v900_v56 = vsel %vm325_vm1, %v673_v19, %v849_v20  ;;  %v901_v21 = vsel %vm325_vm1, %v674_v51, %v850_v57  ;;  %v2465_v51 = vmov 1934713408  }
 0x306   :  { %995 = vmatpush.msrb.mxu0 %v900_v56  ;;  %1015 = vmatpush.msrb.mxu1 %v901_v21  ;;  %v1299_v56 = vunpack.c.l.s4 %v2465_v51 }
 0x307   :  { %2174 = vmatmul.msk.f32.vlgmr.msrb.gmra.mxu0 %vm351_vm13, %v3057_v11  ;;  %2176 = vmatmul.msk.f32.vlgmr.msrb.gmra.mxu1 %vm351_vm13, %v3057_v11  ;;  %vm1637_vm13 = vcmask 392192  }
 0x36b   :  { %v957_v43 = vpop.f32.mrf.mxu2 }
 0x36c   :  { %v1060_v60 = vmax.f32 %v957_v43, 0.0 }
 0x36e   :  { %1086 = vmatpush.msra.mxu0 %v1060_v60 }
 0x36f   :  { %v977_v26 = vpop.f32.mrf.mxu3  ;;  %2182 = vmatmul.msk.f32.vlgmr.msra.gmra.mxu0 %vm495_vm5, %v2181_v46 }
 0x370   :  { %v1061_v13 = vmax.f32 %v977_v26, 0.0 }
 0x372   :  { %1106 = vmatpush.msra.mxu1 %v1061_v13 }
 0x373   :  { %2183 = vmatmul.msk.f32.vlgmr.msra.gmra.mxu1 %vm495_vm5, %v2181_v46 }
 0x37f   :  { %v1037_v34 = vpop.f32.mrf.mxu2  ;;  %v1057_v27 = vpop.f32.mrf.mxu3 }
 0x380   :  { %v1064_v44 = vmax.f32 %v1037_v34, 0.0  ;;  %v1065_v16 = vmax.f32 %v1057_v27, 0.0 }
 0x382   :  { %1166 = vmatpush.msrb.mxu2 %v1064_v44  ;;  %1186 = vmatpush.msrb.mxu3 %v1065_v16 }
 0x383   :  { %2186 = vmatmul.msk.f32.vlgmr.msrb.gmra.mxu2 %vm495_vm5, %v2181_v46  ;;  %2187 = vmatmul.msk.f32.vlgmr.msrb.gmra.mxu3 %vm495_vm5, %v2181_v46 }
 0x384   :  { %v997_v11 = vpop.f32.mrf.mxu0  ;;  %v1017_v9 = vpop.f32.mrf.mxu1 }
 0x385   :  { %v1062_v2 = vmax.f32 %v997_v11, 0.0  ;;  %v1063_v48 = vmax.f32 %v1017_v9, 0.0 }
 0x387   :  { %1126 = vmatpush.msrb.mxu0 %v1062_v2  ;;  %1146 = vmatpush.msrb.mxu1 %v1063_v48 }
 0x388   :  { %2184 = vmatmul.msk.f32.vlgmr.msrb.gmra.mxu0 %vm495_vm5, %v2181_v46  ;;  %2185 = vmatmul.msk.f32.vlgmr.msrb.gmra.mxu1 %vm495_vm5, %v2181_v46  ;;  %v3269_v46 = vunpack.c.0.s8 %v1299_v56  ;;  %vm1643_vm5 = vcmask 785408  }
 0x3ec   :  { %v1088_v7 = vpop.f32.mrf.mxu0 }
 0x3ed   :  { %v1191_v54 = vmul.f32 %v1088_v7, %v620_v55 }
 0x3ef   :  { %v1197_v36 = vadd.f32 %v1191_v54, %v2860_v18 }
 0x3f0   :  { %v1108_v37 = vpop.f32.mrf.mxu1 }
 0x3f1   :  { %v3201_v53 = vmax.f32 %v1197_v36, 0.0  ;;  %v1192_v62 = vmul.f32 %v1108_v37, %v621_v47 }
 0x3f3   :  { %1216 = vrot.lane.b32.xlu2 %v3201_v53, %s2447_s3  ;;  %1213 = vrot.lane.b32.xlu1 %v3201_v53, %s2448_s21  ;;  %v1198_v55 = vadd.f32 %v1192_v62, %v2850_v15 }
 0x3f4   :  { %1210 = vrot.lane.b32.xlu0 %v3201_v53, %s2432_s24 }
 0x3f5   :  { %v1204_v18 = vmax.f32 %v1198_v55, 0.0 }
 0x3fb   :  { %1225 = vrot.lane.b32.xlu2 %v3201_v53, %s2449_s22  ;;  %1222 = vrot.lane.b32.xlu1 %v3201_v53, %s2450_s23 }
 0x3fc   :  { %1219 = vrot.lane.b32.xlu0 %v3201_v53, %s2451_s25 }
 0x403   :  { %1236 = vrot.lane.b32.xlu2 %v1204_v18, %s2452_s26  ;;  %1231 = vrot.lane.b32.xlu1 %v1204_v18, %s2453_s27 }
 0x404   :  { %1229 = vrot.lane.b32.xlu0 %v3201_v53, %s2453_s27 }
 0x405   :  { %v1128_v47 = vpop.f32.mrf.mxu0 }
 0x406   :  { %v1193_v15 = vmul.f32 %v1128_v47, %v622_v24  ;;  %v1168_v8 = vpop.f32.mrf.mxu2 }
 0x407   :  { %v1195_v17 = vmul.f32 %v1168_v8, %v624_v12 }
 0x408   :  { %v1199_v28 = vadd.f32 %v1193_v15, %v2908_v33  ;;  %v1148_v33 = vpop.f32.mrf.mxu1 }
 0x409   :  { %v1201_v24 = vadd.f32 %v1195_v17, %v2893_v25  ;;  %v1194_v12 = vmul.f32 %v1148_v33, %v623_v38  ;;  %v1188_v38 = vpop.f32.mrf.mxu3 }
 0x40a   :  { %v1205_v5 = vmax.f32 %v1199_v28, 0.0 }
 0x40b   :  { %1245 = vrot.lane.b32.xlu2 %v1204_v18, %s2454_s28  ;;  %1242 = vrot.lane.b32.xlu1 %v1204_v18, %s2455_s29  ;;  %v1207_v42 = vmax.f32 %v1201_v24, 0.0  ;;  %v1200_v25 = vadd.f32 %v1194_v12, %v2935_v31  ;;  %v1196_v31 = vmul.f32 %v1188_v38, %v625_v4  ;;  %v2464_v4 = vmov 1983009808  }
 0x40c   :  { %1239 = vrot.lane.b32.xlu0 %v1204_v18, %s2456_s30  ;;  %v1273_v6 = vunpack.c.l.s4 %v2464_v4 }
 0x40d   :  { %v1206_v29 = vmax.f32 %v1200_v25, 0.0  ;;  %v1202_v49 = vadd.f32 %v1196_v31, %v2889_v14 }
 0x40e   :  { %v3259_v39 = vunpack.c.0.s8 %v1273_v6 }
 0x40f   :  { %v1208_v1 = vmax.f32 %v1202_v49, 0.0 }
 0x413   :  { %1255 = vrot.lane.b32.xlu2 %v1204_v18, %s2457_s5  ;;  %1251 = vrot.lane.b32.xlu1 %v1204_v18, %s2458_s6 }
 0x414   :  { %1248 = vrot.lane.b32.xlu0 %v1204_v18, %s2459_s7 }
 0x41b   :  { %1265 = vrot.lane.b32.xlu2 %v1205_v5, %s2460_s8  ;;  %1262 = vrot.lane.b32.xlu1 %v1205_v5, %s2461_s9 }
 0x41c   :  { %1257 = vrot.lane.b32.xlu0 %v1205_v5, %s2457_s5 }
 0x423   :  { %1662 = vrot.lane.b32.xlu2 %v1205_v5, %s2448_s21  ;;  %1686 = vrot.lane.b32.xlu1 %v1207_v42, %s2455_s29 }
 0x424   :  { %1267 = vrot.lane.b32.xlu0 %v1205_v5, %s2462_s10 }
 0x42b   :  { %1709 = vrot.lane.b32.xlu2 %v1205_v5, %s2463_s11  ;;  %1690 = vrot.lane.b32.xlu1 %v1207_v42, %s2454_s28 }
 0x42c   :  { %1665 = vrot.lane.b32.xlu0 %v1205_v5, %s2447_s3 }
 0x433   :  { %1696 = vrot.lane.b32.xlu2 %v1207_v42, %s2457_s5  ;;  %1667 = vrot.lane.b32.xlu1 %v1206_v29, %s2447_s3 }
 0x434   :  { %1660 = vrot.lane.b32.xlu0 %v1205_v5, %s2432_s24  ;;  %s2466_s24 = smov 32  }
 0x43b   :  { %1700 = vrot.lane.b32.xlu2 %v1207_v42, %s2460_s8  ;;  %1681 = vrot.lane.b32.xlu1 %v1206_v29, %s2456_s30 }
 0x43c   :  { %1684 = vrot.lane.b32.xlu0 %v1206_v29, %s2455_s29 }
 0x443   :  { %1692 = vrot.lane.b32.xlu2 %v1207_v42, %s2459_s7  ;;  %1703 = vrot.lane.b32.xlu1 %v1207_v42, %s2462_s10 }
 0x444   :  { %1679 = vrot.lane.b32.xlu0 %v1206_v29, %s2452_s26 }
 0x44b   :  { %1677 = vrot.lane.b32.xlu2 %v1206_v29, %s2453_s27  ;;  %1671 = vrot.lane.b32.xlu1 %v1206_v29, %s2451_s25 }
 0x44c   :  { %1675 = vrot.lane.b32.xlu0 %v1206_v29, %s2449_s22 }
 0x44d   :  { %v1217_v45 = vpop.permute.xlu2 %1216 }
 0x44e   :  { %v1276_v35 = vrot.slane %v1217_v45, 4 }
 0x453   :  { %1705 = vrot.lane.b32.xlu2 %v1208_v1, %s2462_s10  ;;  %1673 = vrot.lane.b32.xlu1 %v1206_v29, %s2450_s23 }
 0x454   :  { %1698 = vrot.lane.b32.xlu0 %v1207_v42, %s2461_s9 }
 0x455   :  { %v1226_v0 = vpop.permute.xlu2 %1225 }
 0x456   :  { %v1282_v32 = vrot.slane %v1226_v0, 4 }
 0x45c   :  { %1694 = vrot.lane.b32.xlu0 %v1207_v42, %s2458_s6 }
 0x45d   :  { %v1237_v10 = vpop.permute.xlu2 %1236 }
 0x465   :  { %v1246_v23 = vpop.permute.xlu2 %1245  ;;  %v1214_v50 = vpop.permute.xlu1 %1213 }
 0x466   :  { %v1269_v14 = vrot.slane %v1214_v50, 4  ;;  %v1211_v41 = vpop.permute.xlu0 %1210  ;;  %v1332_v2 = vrot.slane %v1246_v23, 4 }
 0x467   :  { %v1277_v22 = vsel %vm1270_vm0, %v1276_v35, %v1211_v41 }
 0x468   :  { %v1271_v59 = vsel %vm1270_vm0, %v1269_v14, %v3201_v53  ;;  %v1281_v40 = vperm.slane %v1277_v22, %v3259_v39 }
 0x469   :  { %v1275_v58 = vperm.slane %v1271_v59, %v3259_v39 }
 0x46a   :  { %v1294_v61 = vrot.slane %v1281_v40, 4 }
 0x46b   :  { %v1296_v52 = vrot.slane %v1275_v58, 4 }
 0x46c   :  { %v1295_v3 = vsel %vm1270_vm0, %v1294_v61, %v1275_v58 }
 0x46d   :  { %v1297_v63 = vsel %vm1270_vm0, %v1281_v40, %v1296_v52  ;;  %v1256_v30 = vpop.permute.xlu2 %1255  ;;  %v1223_v20 = vpop.permute.xlu1 %1222  ;;  %v1301_v44 = vperm.slane %v1295_v3, %v3269_v46 }
 0x46e   :  { %v1220_v57 = vpop.permute.xlu0 %1219  ;;  %v1305_v16 = vperm.slane %v1297_v63, %v3269_v46 }
 0x46f   :  { %v1283_v19 = vsel %vm1270_vm0, %v1282_v32, %v1220_v57  ;;  %v1320_v15 = vrot.slane %v1301_v44, 4 }
 0x470   :  { %v1287_v26 = vperm.slane %v1283_v19, %v3259_v39  ;;  %v1324_v55 = vrot.slane %v1305_v16, 4 }
 0x472   :  { %v1308_v11 = vrot.slane %v1287_v26, 4 }
 0x475   :  { %v1232_v21 = vpop.permute.xlu1 %1231  ;;  %v1266_v43 = vpop.permute.xlu2 %1265 }
 0x476   :  { %v1230_v60 = vpop.permute.xlu0 %1229  ;;  %v1386_v22 = vperm.slane %v1266_v43, %v3259_v39 }
 0x477   :  { %v1234_v13 = vsel %vm1233_vm2, %v1230_v60, %v1232_v21 }
 0x478   :  { %v1288_v34 = vrot.slane %v1234_v13, 4 }
 0x47a   :  { %v1289_v27 = vsel %vm1270_vm0, %v1288_v34, %v1223_v20 }
 0x47b   :  { %v1293_v9 = vperm.slane %v1289_v27, %v3259_v39 }
 0x47d   :  { %v1306_v48 = vrot.slane %v1293_v9, 4  ;;  %v1309_v7 = vsel %vm1270_vm0, %v1293_v9, %v1308_v11  ;;  %v1243_v54 = vpop.permute.xlu1 %1242  ;;  %v1663_v36 = vpop.permute.xlu2 %1662 }
 0x47e   :  { %v1326_v53 = vrot.slane %v1243_v54, 4  ;;  %v1240_v37 = vpop.permute.xlu0 %1239  ;;  %1713 = vrot.lane.b32.xlu0 %v1663_v36, %s2463_s11  ;;  %v1317_v62 = vperm.slane %v1309_v7, %v3269_v46 }
 0x47f   :  { %v1333_v18 = vsel %vm1270_vm0, %v1332_v2, %v1240_v37  ;;  %v1307_v47 = vsel %vm1270_vm0, %v1306_v48, %v1287_v26 }
 0x480   :  { %v1327_v28 = vsel %vm1270_vm0, %v1326_v53, %v1237_v10  ;;  %v1337_v8 = vperm.slane %v1333_v18, %v3259_v39  ;;  %v1313_v5 = vperm.slane %v1307_v47, %v3269_v46  ;;  %v1322_v17 = vrot.slane %v1317_v62, 4 }
 0x481   :  { %v1331_v24 = vperm.slane %v1327_v28, %v3259_v39  ;;  %v3286_v42 = vsel %vm1270_vm0, %v1317_v62, %v1324_v55 }
 0x482   :  { %v1350_v33 = vrot.slane %v1337_v8, 4  ;;  %v1321_v12 = vsel %vm1270_vm0, %v1313_v5, %v1320_v15  ;;  %v3290_v25 = vsel %vm1270_vm0, %v1322_v17, %v1305_v16  ;;  %v1318_v38 = vrot.slane %v1313_v5, 4 }
 0x483   :  { %v1352_v29 = vrot.slane %v1331_v24, 4  ;;  %v1426_v43 = vrot.slane %v1321_v12, 1  ;;  %v1436_v60 = vrot.slane %v3286_v42, 1 }
 0x484   :  { %v1351_v31 = vsel %vm1270_vm0, %v1350_v33, %v1331_v24  ;;  %v1319_v1 = vsel %vm1270_vm0, %v1318_v38, %v1301_v44 }
 0x485   :  { %v1353_v49 = vsel %vm1270_vm0, %v1337_v8, %v1352_v29  ;;  %v1252_v45 = vpop.permute.xlu1 %1251  ;;  %v3295_v10 = vpop.permute.xlu2 %1709  ;;  %v1357_v59 = vperm.slane %v1351_v31, %v3269_v46  ;;  %v1421_v9 = vrot.slane %v1319_v1, 1  ;;  %v1431_v8 = vrot.slane %v3290_v25, 1 }
 0x486   :  { %v1249_v0 = vpop.permute.xlu0 %1248  ;;  %v1361_v52 = vperm.slane %v1353_v49, %v3269_v46 }
 0x487   :  { %v1376_v19 = vrot.slane %v1357_v59, 4 }
 0x488   :  { %v1380_v26 = vrot.slane %v1361_v52, 4 }
 0x48d   :  { %v1263_v4 = vpop.permute.xlu1 %1262  ;;  %v1697_v51 = vpop.permute.xlu2 %1696 }
 0x48e   :  { %v1344_v6 = vrot.slane %v1263_v4, 4  ;;  %v1258_v35 = vpop.permute.xlu0 %1257 }
 0x48f   :  { %v1260_v23 = vsel %vm1259_vm3, %v1256_v30, %v1258_v35  ;;  %v1394_v30 = vrot.slane %v1386_v22, 4 }
 0x490   :  { %v1345_v50 = vsel %vm1270_vm0, %v1344_v6, %v1252_v45  ;;  %v1338_v14 = vrot.slane %v1260_v23, 4 }
 0x491   :  { %v1349_v41 = vperm.slane %v1345_v50, %v3259_v39 }
 0x492   :  { %v1339_v40 = vsel %vm1270_vm0, %v1338_v14, %v1249_v0 }
 0x493   :  { %v1362_v58 = vrot.slane %v1349_v41, 4  ;;  %v1343_v61 = vperm.slane %v1339_v40, %v3259_v39 }
 0x495   :  { %v1363_v3 = vsel %vm1270_vm0, %v1362_v58, %v1343_v61  ;;  %v1364_v32 = vrot.slane %v1343_v61, 4  ;;  %v3305_v63 = vpop.permute.xlu1 %1686  ;;  %v1701_v1 = vpop.permute.xlu2 %1700 }
 0x496   :  { %v1268_v20 = vpop.permute.xlu0 %1267  ;;  %v1369_v57 = vperm.slane %v1363_v3, %v3269_v46 }
 0x497   :  { %v1391_v56 = vperm.slane %v1268_v20, %v3259_v39  ;;  %v1365_v21 = vsel %vm1270_vm0, %v1349_v41, %v1364_v32 }
 0x498   :  { %v1373_v13 = vperm.slane %v1365_v21, %v3269_v46  ;;  %v1374_v34 = vrot.slane %v1369_v57, 4  ;;  %v1377_v27 = vsel %vm1270_vm0, %v1369_v57, %v1376_v19 }
 0x499   :  { %v1392_v44 = vrot.slane %v1391_v56, 4  ;;  %v1395_v16 = vsel %vm1270_vm0, %v1391_v56, %v1394_v30  ;;  %v1427_v11 = vrot.slane %v1377_v27, 1 }
 0x49a   :  { %v1403_v2 = vperm.slane %v1395_v16, %v3269_v46  ;;  %v1381_v48 = vsel %vm1270_vm0, %v1373_v13, %v1380_v26  ;;  %v1375_v7 = vsel %vm1270_vm0, %v1374_v34, %v1357_v59  ;;  %v1378_v54 = vrot.slane %v1373_v13, 4 }
 0x49b   :  { %v1393_v36 = vsel %vm1270_vm0, %v1392_v44, %v1386_v22  ;;  %v1437_v53 = vrot.slane %v1381_v48, 1  ;;  %v1422_v37 = vrot.slane %v1375_v7, 1  ;;  %v1428_v62 = vsel %vm1420_vm4, %v1426_v43, %v1427_v11 }
 0x49c   :  { %v1399_v55 = vperm.slane %v1393_v36, %v3269_v46  ;;  %v1406_v18 = vrot.slane %v1403_v2, 4  ;;  %v1379_v47 = vsel %vm1270_vm0, %v1378_v54, %v1361_v52  ;;  %v1434_v15 = vrot.slane %v1403_v2, 1 }
 0x49d   :  { %v1691_v28 = vpop.permute.xlu1 %1690  ;;  %v1432_v5 = vrot.slane %v1379_v47, 1  ;;  %v1438_v17 = vsel %vm1420_vm4, %v1436_v60, %v1437_v53  ;;  %v1423_v24 = vsel %vm1420_vm4, %v1421_v9, %v1422_v37  ;;  %v1693_v50 = vpop.permute.xlu2 %1692 }
 0x49e   :  { %v1666_v42 = vpop.permute.xlu0 %1665  ;;  %1731 = vrot.lane.b32.xlu2 %v1691_v28, %s2463_s11  ;;  %v1407_v33 = vsel %vm1270_vm0, 0.0, %v1406_v18  ;;  %v1424_v12 = vrot.slane %v1399_v55, 1  ;;  %v1404_v29 = vrot.slane %v1399_v55, 4 }
 0x49f   :  { %v1439_v38 = vrot.slane %v1407_v33, 1  ;;  %v1433_v31 = vsel %vm1420_vm4, %v1431_v8, %v1432_v5  ;;  %v1435_v49 = vsel %vm1420_vm4, %v1432_v5, %v1434_v15 }
 0x4a0   :  { %v1425_v45 = vsel %vm1420_vm4, %v1422_v37, %v1424_v12  ;;  %v1405_v25 = vsel %vm1270_vm0, 0.0, %v1404_v29 }
 0x4a1   :  { %v1440_v0 = vsel %vm1420_vm4, %v1437_v53, %v1439_v38  ;;  %v1429_v4 = vrot.slane %v1405_v25, 1 }
 0x4a3   :  { %v1430_v6 = vsel %vm1420_vm4, %v1427_v11, %v1429_v4 }
 0x4a5   :  { %v1668_v35 = vpop.permute.xlu1 %1667  ;;  %v1678_v22 = vpop.permute.xlu2 %1677 }
 0x4a6   :  { %v1661_v23 = vpop.permute.xlu0 %1660  ;;  %v1670_v20 = vsel %vm1669_vm8, %v1666_v42, %v1668_v35 }
 0x4a7   :  { %1711 = vrot.lane.b32.xlu0 %v1661_v23, %s2463_s11 }
 0x4ad   :  { %v1682_v14 = vpop.permute.xlu1 %1681  ;;  %v1706_v52 = vpop.permute.xlu2 %1705 }
 0x4ae   :  { %v1685_v41 = vpop.permute.xlu0 %1684  ;;  %1727 = vrot.lane.b32.xlu2 %v1682_v14, %s2463_s11 }
 0x4af   :  { %1737 = vrot.lane.b32.xlu0 %v1697_v51, %s2463_s11  ;;  %v1689_v40 = vsel %vm1688_vm6, %v1685_v41, %v3305_v63 }
 0x4b5   :  { %v1704_v61 = vpop.permute.xlu1 %1703 }
 0x4b6   :  { %v1680_v59 = vpop.permute.xlu0 %1679  ;;  %1723 = vrot.lane.b32.xlu2 %v1678_v22, %s2463_s11  ;;  %v1708_v3 = vsel %vm1707_vm7, %v1704_v61, %v1706_v52 }
 0x4b7   :  { %1733 = vrot.lane.b32.xlu0 %v1693_v50, %s2463_s11  ;;  %1725 = vrot.lane.b32.xlu1 %v1680_v59, %s2463_s11 }
 0x4bd   :  { %v1672_v63 = vpop.permute.xlu1 %1671 }
 0x4be   :  { %v1676_v58 = vpop.permute.xlu0 %1675  ;;  %1729 = vrot.lane.b32.xlu2 %v1689_v40, %s2463_s11 }
 0x4bf   :  { %1741 = vrot.lane.b32.xlu1 %v1701_v1, %s2463_s11 }
 0x4c5   :  { %v1674_v57 = vpop.permute.xlu1 %1673 }
 0x4c6   :  { %v1699_v32 = vpop.permute.xlu0 %1698  ;;  %1743 = vrot.lane.b32.xlu2 %v1708_v3, %s2463_s11 }
 0x4c7   :  { %1721 = vrot.lane.b32.xlu1 %v1676_v58, %s2463_s11 }
 0x4ce   :  { %v1695_v30 = vpop.permute.xlu0 %1694  ;;  %1455 = vrot.lane.b32.xlu2 %v1440_v0, %s2431_s0 }
 0x4cf   :  { %1735 = vrot.lane.b32.xlu0 %v1695_v30, %s2463_s11  ;;  %1739 = vrot.lane.b32.xlu1 %v1699_v32, %s2463_s11 }
 0x4d6   :  { %1443 = vrot.lane.b32.xlu2 %v1425_v45, %s2431_s0 }
 0x4d7   :  { %1715 = vrot.lane.b32.xlu0 %v1670_v20, %s2463_s11  ;;  %1717 = vrot.lane.b32.xlu1 %v1672_v63, %s2463_s11 }
 0x4de   :  { %1449 = vrot.lane.b32.xlu2 %v1433_v31, %s2431_s0 }
 0x4df   :  { %1445 = vrot.lane.b32.xlu0 %v1428_v62, %s2431_s0  ;;  %1719 = vrot.lane.b32.xlu1 %v1674_v57, %s2463_s11 }
 0x4e7   :  { %1451 = vrot.lane.b32.xlu0 %v1435_v49, %s2431_s0  ;;  %1447 = vrot.lane.b32.xlu1 %v1430_v6, %s2431_s0 }
 0x4ef   :  { %1453 = vrot.lane.b32.xlu1 %v1438_v17, %s2431_s0 }
 0x4f0   :  { %v1714_v51 = vpop.permute.xlu0 %1713 }
 0x4f1   :  { %v1761_v38 = vrot.slane %v1714_v51, 4 }
 0x4f3   :  { %v1762_v50 = vsel %vm1270_vm0, %v1761_v38, %v3295_v10 }
 0x4f4   :  { %v1766_v3 = vperm.slane %v1762_v50, %v3259_v39 }
 0x4f7   :  { %1441 = vrot.lane.b32.xlu1 %v1423_v24, %s2431_s0 }
 0x4f8   :  { %v1732_v19 = vpop.permute.xlu2 %1731 }
 0x4f9   :  { %v1823_v54 = vrot.slane %v1732_v19, 4 }
 0x508   :  { %v1728_v56 = vpop.permute.xlu2 %1727 }
 0x509   :  { %v1824_v55 = vsel %vm1270_vm0, %v1823_v54, %v1728_v56 }
 0x50a   :  { %v1828_v5 = vperm.slane %v1824_v55, %v3259_v39 }
 0x50c   :  { %v1841_v59 = vrot.slane %v1828_v5, 4 }
 0x510   :  { %v1724_v60 = vpop.permute.xlu2 %1723 }
 0x511   :  { %v1779_v32 = vrot.slane %v1724_v60, 4 }
 0x518   :  { %v1730_v34 = vpop.permute.xlu2 %1729 }
 0x519   :  { %v1712_v21 = vpop.permute.xlu0 %1711  ;;  %v1817_v16 = vrot.slane %v1730_v34, 4 }
 0x520   :  { %v1744_v36 = vpop.permute.xlu2 %1743 }
 0x521   :  { %v1738_v26 = vpop.permute.xlu0 %1737  ;;  %v3366_v28 = vperm.slane %v1744_v36, %v3259_v39 }
 0x522   :  { %v1829_v11 = vrot.slane %v1738_v26, 4 }
 0x528   :  { %v3398_v10 = vpop.permute.xlu2 %1455 }
 0x529   :  { %v1726_v43 = vpop.permute.xlu1 %1725  ;;  %v1734_v27 = vpop.permute.xlu0 %1733 }
 0x52a   :  { %v1818_v9 = vsel %vm1270_vm0, %v1817_v16, %v1726_v43  ;;  %v1830_v2 = vsel %vm1270_vm0, %v1829_v11, %v1734_v27  ;;  %v1787_v43 = vrot.slane %v1766_v3, 4 }
 0x52b   :  { %v1822_v7 = vperm.slane %v1818_v9, %v3259_v39  ;;  %v1834_v53 = vperm.slane %v1830_v2, %v3259_v39 }
 0x52d   :  { %v1843_v15 = vrot.slane %v1822_v7, 4  ;;  %v1855_v17 = vrot.slane %v1834_v53, 4  ;;  %v1842_v30 = vsel %vm1270_vm0, %v1841_v59, %v1822_v7 }
 0x52e   :  { %v1848_v51 = vperm.slane %v1842_v30, %v3269_v46 }
 0x52f   :  { %v1844_v33 = vsel %vm1270_vm0, %v1828_v5, %v1843_v15 }
 0x530   :  { %v3382_v25 = vperm.slane %v1844_v33, %v3269_v46  ;;  %v1867_v16 = vrot.slane %v1848_v51, 4 }
 0x531   :  { %v1742_v13 = vpop.permute.xlu1 %1741 }
 0x532   :  { %v3359_v48 = vperm.slane %v1742_v13, %v3259_v39 }
 0x534   :  { %v1885_v18 = vrot.slane %v3359_v48, 4 }
 0x536   :  { %v1886_v42 = vsel %vm1270_vm0, %v3366_v28, %v1885_v18 }
 0x537   :  { %v3379_v31 = vperm.slane %v1886_v42, %v3269_v46 }
 0x539   :  { %v1722_v44 = vpop.permute.xlu1 %1721  ;;  %v1924_v22 = vrot.slane %v3379_v31, 1 }
 0x53a   :  { %v1773_v1 = vrot.slane %v1722_v44, 4 }
 0x541   :  { %v1736_v37 = vpop.permute.xlu0 %1735  ;;  %v1740_v62 = vpop.permute.xlu1 %1739 }
 0x542   :  { %v1835_v47 = vrot.slane %v1740_v62, 4  ;;  %v3416_v62 = vpop.permute.xlu2 %1443 }
 0x543   :  { %v1523_v30 = vrot.slane %v3416_v62, 4 }
 0x544   :  { %v1836_v8 = vsel %vm1270_vm0, %v1835_v47, %v1736_v37 }
 0x545   :  { %v1840_v24 = vperm.slane %v1836_v8, %v3259_v39 }
 0x547   :  { %v1856_v12 = vsel %vm1270_vm0, %v1840_v24, %v1855_v17  ;;  %v1853_v40 = vrot.slane %v1840_v24, 4 }
 0x548   :  { %v3376_v29 = vperm.slane %v1856_v12, %v3269_v46 }
 0x549   :  { %v1716_v49 = vpop.permute.xlu0 %1715  ;;  %v1718_v45 = vpop.permute.xlu1 %1717  ;;  %v1854_v19 = vsel %vm1270_vm0, %v1853_v40, %v1834_v53  ;;  %v1897_v40 = vrot.slane %v3379_v31, 4 }
 0x54a   :  { %v1767_v0 = vrot.slane %v1716_v49, 4  ;;  %v1869_v4 = vrot.slane %v3376_v29, 4  ;;  %v1774_v35 = vsel %vm1270_vm0, %v1773_v1, %v1718_v45  ;;  %v1860_v34 = vperm.slane %v1854_v19, %v3269_v46  ;;  %v1450_v59 = vpop.permute.xlu2 %1449 }
 0x54b   :  { %v1778_v61 = vperm.slane %v1774_v35, %v3259_v39  ;;  %v1871_v49 = vrot.slane %v3382_v25, 4  ;;  %v1883_v45 = vrot.slane %v3366_v28, 4 }
 0x54c   :  { %v1768_v6 = vsel %vm1270_vm0, %v1767_v0, %v1712_v21  ;;  %v1870_v23 = vsel %vm1270_vm0, %v1869_v4, %v3382_v25  ;;  %v3414_v53 = vsel %vm1270_vm0, %v1860_v34, %v1867_v16  ;;  %v1865_v37 = vrot.slane %v1860_v34, 4 }
 0x54d   :  { %v1772_v14 = vperm.slane %v1768_v6, %v3259_v39  ;;  %v1922_v41 = vrot.slane %v1870_v23, 1  ;;  %v1799_v56 = vrot.slane %v1778_v61, 4  ;;  %v1917_v8 = vrot.slane %v3414_v53, 1 }
 0x54e   :  { %v1866_v12 = vsel %vm1270_vm0, %v1865_v37, %v1848_v51  ;;  %v1872_v35 = vsel %vm1270_vm0, %v3376_v29, %v1871_v49  ;;  %v1884_v23 = vsel %vm1270_vm0, %v1883_v45, %v3359_v48 }
 0x54f   :  { %v1785_v58 = vrot.slane %v1772_v14, 4  ;;  %v1925_v52 = vsel %vm1420_vm4, %v1922_v41, %v1924_v22  ;;  %v1788_v27 = vsel %vm1270_vm0, %v1772_v14, %v1787_v43  ;;  %v1912_v4 = vrot.slane %v1866_v12, 1 }
 0x550   :  { %1941 = vrot.lane.b32.xlu1 %v1925_v52, %s2431_s0  ;;  %v1796_v54 = vperm.slane %v1788_v27, %v3269_v46  ;;  %v1927_v25 = vrot.slane %v1872_v35, 1  ;;  %v1890_v28 = vperm.slane %v1884_v23, %v3269_v46  ;;  %v1533_v52 = vrot.slane %v3398_v10, 4 }
 0x551   :  { %v1720_v63 = vpop.permute.xlu1 %1719  ;;  %v1786_v20 = vsel %vm1270_vm0, %v1785_v58, %v1766_v3  ;;  %v1446_v17 = vpop.permute.xlu0 %1445  ;;  %v1465_v3 = vrot.slane %v1450_v59, 4 }
 0x552   :  { %v1780_v57 = vsel %vm1270_vm0, %v1779_v32, %v1720_v63  ;;  %v1792_v13 = vperm.slane %v1786_v20, %v3269_v46  ;;  %v1815_v5 = vrot.slane %v1796_v54, 4  ;;  %v1479_v22 = vrot.slane %v1446_v17, 4 }
 0x553   :  { %v1784_v21 = vperm.slane %v1780_v57, %v3259_v39  ;;  %v1914_v20 = vrot.slane %v1890_v28, 1  ;;  %v1898_v57 = vsel %vm1270_vm0, 0.0, %v1897_v40 }
 0x554   :  { %v1811_v36 = vrot.slane %v1792_v13, 4  ;;  %v1929_v27 = vrot.slane %v1898_v57, 1 }
 0x555   :  { %v1797_v60 = vrot.slane %v1784_v21, 4  ;;  %v1800_v26 = vsel %vm1270_vm0, %v1784_v21, %v1799_v56 }
 0x556   :  { %v1808_v44 = vperm.slane %v1800_v26, %v3269_v46 }
 0x557   :  { %v1798_v11 = vsel %vm1270_vm0, %v1797_v60, %v1778_v61  ;;  %v1915_v60 = vsel %vm1420_vm4, %v1912_v4, %v1914_v20 }
 0x558   :  { %v1804_v9 = vperm.slane %v1798_v11, %v3269_v46  ;;  %v1813_v2 = vrot.slane %v1808_v44, 4  ;;  %v1816_v38 = vsel %vm1270_vm0, %v1808_v44, %v1815_v5  ;;  %v1895_v5 = vrot.slane %v1890_v28, 4 }
 0x559   :  { %v1448_v7 = vpop.permute.xlu1 %1447  ;;  %v1926_v50 = vrot.slane %v1816_v38, 1  ;;  %v1452_v32 = vpop.permute.xlu0 %1451 }
 0x55a   :  { %v1814_v55 = vsel %vm1270_vm0, %v1813_v2, %v1796_v54  ;;  %v1812_v18 = vsel %vm1270_vm0, %v1804_v9, %v1811_v36  ;;  %v1809_v33 = vrot.slane %v1804_v9, 4  ;;  %v1535_v14 = vrot.slane %v1448_v7, 4 }
 0x55b   :  { %v1921_v47 = vrot.slane %v1814_v55, 1  ;;  %v1916_v15 = vrot.slane %v1812_v18, 1  ;;  %v1928_v29 = vsel %vm1420_vm4, %v1926_v50, %v1927_v25  ;;  %v1521_v43 = vrot.slane %v1452_v32, 4 }
 0x55c   :  { %v1810_v1 = vsel %vm1270_vm0, %v1809_v33, %v1792_v13  ;;  %v1536_v48 = vsel %vm1270_vm0, %v3398_v10, %v1535_v14  ;;  %v1534_v10 = vsel %vm1270_vm0, %v1533_v52, %v1448_v7  ;;  %v1524_v13 = vsel %vm1270_vm0, %v1452_v32, %v1523_v30 }
 0x55d   :  { %v1923_v24 = vsel %vm1420_vm4, %v1921_v47, %v1922_v41  ;;  %v1918_v42 = vsel %vm1420_vm4, %v1916_v15, %v1917_v8  ;;  %v1911_v0 = vrot.slane %v1810_v1, 1  ;;  %v1544_v19 = vperm.slane %v1536_v48, %v3259_v39 }
 0x55e   :  { %1939 = vrot.lane.b32.xlu2 %v1923_v24, %s2431_s0  ;;  %1935 = vrot.lane.b32.xlu1 %v1918_v42, %s2431_s0  ;;  %v1540_v2 = vperm.slane %v1534_v10, %v3259_v39  ;;  %v1930_v54 = vsel %vm1420_vm4, %v1927_v25, %v1929_v27  ;;  %v1522_v36 = vsel %vm1270_vm0, %v1521_v43, %v3416_v62  ;;  %v1896_v38 = vsel %vm1270_vm0, 0.0, %v1895_v5 }
 0x55f   :  { %v1913_v41 = vsel %vm1420_vm4, %v1911_v0, %v1912_v4  ;;  %v1557_v7 = vrot.slane %v1544_v19, 4  ;;  %v1532_v18 = vperm.slane %v1524_v13, %v3259_v39  ;;  %v1919_v45 = vrot.slane %v1896_v38, 1 }
 0x560   :  { %1931 = vrot.lane.b32.xlu0 %v1913_v41, %s2431_s0  ;;  %v1545_v24 = vrot.slane %v1540_v2, 4 }
 0x561   :  { %v1454_v6 = vpop.permute.xlu1 %1453  ;;  %v1558_v62 = vsel %vm1270_vm0, %v1557_v7, %v1532_v18  ;;  %v1559_v35 = vrot.slane %v1532_v18, 4  ;;  %v1920_v23 = vsel %vm1420_vm4, %v1917_v8, %v1919_v45 }
 0x562   :  { %v1477_v58 = vrot.slane %v1454_v6, 4  ;;  %v1480_v61 = vsel %vm1270_vm0, %v1454_v6, %v1479_v22  ;;  %v1564_v42 = vperm.slane %v1558_v62, %v3269_v46 }
 0x563   :  { %v1488_v63 = vperm.slane %v1480_v61, %v3259_v39  ;;  %v1560_v22 = vsel %vm1270_vm0, %v1544_v19, %v1559_v35 }
 0x564   :  { %v1478_v51 = vsel %vm1270_vm0, %v1477_v58, %v1446_v17  ;;  %v1528_v17 = vperm.slane %v1522_v36, %v3259_v39  ;;  %v1568_v53 = vperm.slane %v1560_v22, %v3269_v46  ;;  %v1573_v40 = vrot.slane %v1564_v42, 4 }
 0x565   :  { %v1484_v44 = vperm.slane %v1478_v51, %v3259_v39  ;;  %v1501_v16 = vrot.slane %v1488_v63, 4 }
 0x566   :  { %1943 = vrot.lane.b32.xlu2 %v1928_v29, %s2431_s0  ;;  %v1546_v49 = vsel %vm1270_vm0, %v1545_v24, %v1528_v17  ;;  %v1547_v4 = vrot.slane %v1528_v17, 4  ;;  %v1574_v48 = vsel %vm1270_vm0, 0.0, %v1573_v40 }
 0x567   :  { %v3480_v0 = vperm.slane %v1546_v49, %v3269_v46 }
 0x568   :  { %1933 = vrot.lane.b32.xlu0 %v1915_v60, %s2431_s0  ;;  %v1548_v41 = vsel %vm1270_vm0, %v1540_v2, %v1547_v4 }
 0x569   :  { %v1442_v31 = vpop.permute.xlu1 %1441  ;;  %v1569_v14 = vrot.slane %v3480_v0, 4  ;;  %v1556_v28 = vperm.slane %v1548_v41, %v3269_v46 }
 0x56a   :  { %v1466_v56 = vsel %vm1270_vm0, %v1465_v3, %v1442_v31  ;;  %v1467_v21 = vrot.slane %v1442_v31, 4  ;;  %v1575_v31 = vrot.slane %v1568_v53, 4 }
 0x56b   :  { %v1472_v26 = vperm.slane %v1466_v56, %v3259_v39  ;;  %v1570_v25 = vsel %vm1270_vm0, 0.0, %v1569_v14  ;;  %v1571_v8 = vrot.slane %v1556_v28, 4 }
 0x56c   :  { %v1468_v34 = vsel %vm1270_vm0, %v1450_v59, %v1467_v21  ;;  %v1489_v59 = vrot.slane %v1484_v44, 4  ;;  %v1576_v57 = vsel %vm1270_vm0, 0.0, %v1575_v31 }
 0x56d   :  { %v1476_v11 = vperm.slane %v1468_v34, %v3259_v39  ;;  %v1491_v9 = vrot.slane %v1472_v26, 4  ;;  %v1572_v61 = vsel %vm1270_vm0, 0.0, %v1571_v8 }
 0x56e   :  { %1945 = vrot.lane.b32.xlu2 %v1930_v54, %s2431_s0  ;;  %v1490_v58 = vsel %vm1270_vm0, %v1489_v59, %v1472_v26 }
 0x56f   :  { %v1502_v37 = vsel %vm1270_vm0, %v1501_v16, %v1476_v11  ;;  %v1492_v55 = vsel %vm1270_vm0, %v1484_v44, %v1491_v9  ;;  %v1503_v12 = vrot.slane %v1476_v11, 4  ;;  %v3504_v52 = vperm.slane %v1490_v58, %v3269_v46 }
 0x570   :  { %v1508_v47 = vperm.slane %v1502_v37, %v3269_v46  ;;  %v1500_v15 = vperm.slane %v1492_v55, %v3269_v46 }
 0x571   :  { %v1504_v6 = vsel %vm1270_vm0, %v1488_v63, %v1503_v12  ;;  %v1513_v32 = vrot.slane %v3504_v52, 4 }
 0x572   :  { %1582 = vrot.lane.b32.xlu1 %v1500_v15, %s2466_s24  ;;  %1590 = vrot.lane.b32.xlu0 %v1508_v47, %s2467_s12  ;;  %v1517_v33 = vrot.slane %v1508_v47, 4  ;;  %v1512_v50 = vperm.slane %v1504_v6, %v3269_v46  ;;  %v1515_v29 = vrot.slane %v1500_v15, 4 }
 0x573   :  { %v1514_v30 = vsel %vm1270_vm0, 0.0, %v1513_v32 }
 0x574   :  { %v1518_v1 = vsel %vm1270_vm0, 0.0, %v1517_v33  ;;  %v1516_v3 = vsel %vm1270_vm0, 0.0, %v1515_v29  ;;  %v1519_v63 = vrot.slane %v1512_v50, 4 }
 0x576   :  { %1618 = vrot.lane.b32.xlu2 %v1564_v42, %s2467_s12  ;;  %v1520_v20 = vsel %vm1270_vm0, 0.0, %v1519_v63 }
 0x57a   :  { %1594 = vrot.lane.b32.xlu1 %v1518_v1, %s2468_s13  ;;  %1937 = vrot.lane.b32.xlu0 %v1920_v23, %s2431_s0  ;;  %s2470_s0 = smov 48  }
 0x57e   :  { %1598 = vrot.lane.b32.xlu2 %v1512_v50, %s2460_s8 }
 0x582   :  { %1606 = vrot.lane.b32.xlu1 %v1570_v25, %s2469_s14  ;;  %1626 = vrot.lane.b32.xlu0 %v1568_v53, %s2460_s8 }
 0x586   :  { %1610 = vrot.lane.b32.xlu2 %v1556_v28, %s2466_s24 }
 0x58a   :  { %1614 = vrot.lane.b32.xlu1 %v1572_v61, %s2470_s0  ;;  %1622 = vrot.lane.b32.xlu0 %v1574_v48, %s2468_s13 }
 0x58e   :  { %1586 = vrot.lane.b32.xlu2 %v1516_v3, %s2470_s0 }
 0x592   :  { %1578 = vrot.lane.b32.xlu0 %v1514_v30, %s2469_s14 }
 0x59a   :  { %1602 = vrot.lane.b32.xlu0 %v1520_v20, %s2452_s26 }
 0x5a2   :  { %1630 = vrot.lane.b32.xlu0 %v1576_v57, %s2452_s26 }
 0x5b8   :  { %v1940_v19 = vpop.permute.xlu2 %1939 }
 0x5b9   :  { %v1955_v34 = vrot.slane %v1940_v19, 4 }
 0x5c0   :  { %v1944_v56 = vpop.permute.xlu2 %1943 }
 0x5c1   :  { %v1967_v21 = vrot.slane %v1944_v56, 4 }
 0x5c2   :  { %v1942_v51 = vpop.permute.xlu1 %1941 }
 0x5c3   :  { %v2011_v42 = vrot.slane %v1942_v51, 4 }
 0x5c8   :  { %v1946_v24 = vpop.permute.xlu2 %1945 }
 0x5c9   :  { %v2023_v49 = vrot.slane %v1946_v24, 4 }
 0x5d0   :  { %v1936_v43 = vpop.permute.xlu1 %1935  ;;  %v3539_v35 = vpop.permute.xlu2 %1618 }
 0x5d1   :  { %v1968_v10 = vsel %vm1270_vm0, %v1967_v21, %v1936_v43  ;;  %v1969_v60 = vrot.slane %v1936_v43, 4 }
 0x5d2   :  { %v1974_v26 = vperm.slane %v1968_v10, %v3259_v39  ;;  %v1932_v16 = vpop.permute.xlu0 %1931 }
 0x5d3   :  { %v1970_v13 = vsel %vm1270_vm0, %v1944_v56, %v1969_v60  ;;  %v1956_v11 = vsel %vm1270_vm0, %v1955_v34, %v1932_v16  ;;  %v1957_v9 = vrot.slane %v1932_v16, 4 }
 0x5d4   :  { %v1978_v27 = vperm.slane %v1970_v13, %v3259_v39  ;;  %v1979_v44 = vrot.slane %v1974_v26, 4  ;;  %v1962_v7 = vperm.slane %v1956_v11, %v3259_v39 }
 0x5d5   :  { %v1958_v54 = vsel %vm1270_vm0, %v1940_v19, %v1957_v9 }
 0x5d6   :  { %v1991_v2 = vrot.slane %v1978_v27, 4  ;;  %v1966_v36 = vperm.slane %v1958_v54, %v3259_v39  ;;  %v1980_v37 = vsel %vm1270_vm0, %v1979_v44, %v1962_v7  ;;  %v1981_v23 = vrot.slane %v1962_v7, 4 }
 0x5d7   :  { %v3526_v55 = vperm.slane %v1980_v37, %v3269_v46 }
 0x5d8   :  { %v1992_v18 = vsel %vm1270_vm0, %v1991_v2, %v1966_v36  ;;  %v1982_v40 = vsel %vm1270_vm0, %v1974_v26, %v1981_v23  ;;  %v1993_v63 = vrot.slane %v1966_v36, 4 }
 0x5d9   :  { %v1998_v47 = vperm.slane %v1992_v18, %v3269_v46  ;;  %v2003_v15 = vrot.slane %v3526_v55, 4  ;;  %v1990_v30 = vperm.slane %v1982_v40, %v3269_v46 }
 0x5da   :  { %v1934_v5 = vpop.permute.xlu0 %1933  ;;  %v1994_v31 = vsel %vm1270_vm0, %v1978_v27, %v1993_v63 }
 0x5db   :  { %2080 = vrot.lane.b32.xlu1 %v1998_v47, %s2467_s12  ;;  %v2004_v17 = vsel %vm1270_vm0, 0.0, %v2003_v15  ;;  %v2012_v33 = vsel %vm1270_vm0, %v2011_v42, %v1934_v5  ;;  %v2013_v45 = vrot.slane %v1934_v5, 4  ;;  %v2005_v20 = vrot.slane %v1990_v30, 4 }
 0x5dc   :  { %2068 = vrot.lane.b32.xlu0 %v2004_v17, %s2469_s14  ;;  %v2018_v12 = vperm.slane %v2012_v33, %v3259_v39  ;;  %v2002_v56 = vperm.slane %v1994_v31, %v3269_v46  ;;  %v2007_v26 = vrot.slane %v1998_v47, 4 }
 0x5dd   :  { %v2014_v41 = vsel %vm1270_vm0, %v1942_v51, %v2013_v45  ;;  %v2006_v51 = vsel %vm1270_vm0, 0.0, %v2005_v20 }
 0x5de   :  { %v2037_v50 = vrot.slane %v2018_v12, 4  ;;  %v2022_v8 = vperm.slane %v2014_v41, %v3259_v39  ;;  %v2008_v44 = vsel %vm1270_vm0, 0.0, %v2007_v26  ;;  %v2009_v33 = vrot.slane %v2002_v56, 4 }
 0x5e0   :  { %v2049_v57 = vrot.slane %v2022_v8, 4 }
 0x5e4   :  { %v3534_v62 = vpop.permute.xlu0 %1590  ;;  %v1583_v38 = vpop.permute.xlu1 %1582 }
 0x5ec   :  { %v1938_v1 = vpop.permute.xlu0 %1937  ;;  %v1595_v61 = vpop.permute.xlu1 %1594 }
 0x5ed   :  { %v2024_v4 = vsel %vm1270_vm0, %v2023_v49, %v1938_v1  ;;  %v2025_v6 = vrot.slane %v1938_v1, 4 }
 0x5ee   :  { %v2030_v14 = vperm.slane %v2024_v4, %v3259_v39  ;;  %v2010_v4 = vsel %vm1270_vm0, 0.0, %v2009_v33 }
 0x5ef   :  { %v2026_v22 = vsel %vm1270_vm0, %v1946_v24, %v2025_v6 }
 0x5f0   :  { %v2034_v25 = vperm.slane %v2026_v22, %v3259_v39  ;;  %v2038_v28 = vsel %vm1270_vm0, %v2030_v14, %v2037_v50  ;;  %v1599_v39 = vpop.permute.xlu2 %1598  ;;  %v2035_v21 = vrot.slane %v2030_v14, 4 }
 0x5f1   :  { %v2046_v53 = vperm.slane %v2038_v28, %v3269_v46 }
 0x5f2   :  { %v2047_v59 = vrot.slane %v2034_v25, 4  ;;  %v2050_v10 = vsel %vm1270_vm0, %v2034_v25, %v2049_v57  ;;  %v2036_v34 = vsel %vm1270_vm0, %v2035_v21, %v2018_v12 }
 0x5f3   :  { %2100 = vrot.lane.b32.xlu2 %v2046_v53, %s2466_s24  ;;  %v2061_v58 = vrot.slane %v2046_v53, 4  ;;  %v2058_v60 = vperm.slane %v2050_v10, %v3269_v46  ;;  %v2042_v16 = vperm.slane %v2036_v34, %v3269_v46 }
 0x5f4   :  { %v1627_v29 = vpop.permute.xlu0 %1626  ;;  %v2048_v48 = vsel %vm1270_vm0, %v2047_v59, %v2022_v8  ;;  %v1607_v43 = vpop.permute.xlu1 %1606 }
 0x5f5   :  { %v2062_v3 = vsel %vm1270_vm0, 0.0, %v2061_v58  ;;  %v2054_v32 = vperm.slane %v2048_v48, %v3269_v46  ;;  %v1647_v9 = vsel %vm1633_vm9, %v3480_v0, %v1607_v43  ;;  %v2059_v54 = vrot.slane %v2042_v16, 4 }
 0x5f6   :  { %2104 = vrot.lane.b32.xlu1 %v2062_v3, %s2470_s0  ;;  %v2065_v17 = vrot.slane %v2058_v60, 4 }
 0x5f7   :  { %2108 = vrot.lane.b32.xlu0 %v2054_v32, %s2467_s12  ;;  %v2063_v11 = vrot.slane %v2054_v32, 4 }
 0x5f8   :  { %v1611_v13 = vpop.permute.xlu2 %1610  ;;  %v2066_v12 = vsel %vm1270_vm0, 0.0, %v2065_v17 }
 0x5f9   :  { %v1648_v36 = vsel %vm1635_vm12, %v1647_v9, %v1611_v13  ;;  %v2064_v18 = vsel %vm1270_vm0, 0.0, %v2063_v11 }
 0x5fb   :  { %2072 = vrot.lane.b32.xlu2 %v1990_v30, %s2466_s24 }
 0x5fc   :  { %v1623_v19 = vpop.permute.xlu0 %1622  ;;  %v1615_v7 = vpop.permute.xlu1 %1614 }
 0x5fd   :  { %v1649_v46 = vsel %vm1637_vm13, %v1648_v36, %v1615_v7 }
 0x5fe   :  { %2076 = vrot.lane.b32.xlu1 %v2006_v51, %s2470_s0  ;;  %v1650_v5 = vsel %vm1639_vm14, %v1649_v46, %v3539_v35 }
 0x5ff   :  { %2088 = vrot.lane.b32.xlu0 %v2002_v56, %s2460_s8  ;;  %v1651_v42 = vsel %vm1641_vm15, %v1650_v5, %v1623_v19 }
 0x600   :  { %v1587_v47 = vpop.permute.xlu2 %1586  ;;  %v1652_v45 = vsel %vm1643_vm5, %v1651_v42, %v1627_v29 }
 0x603   :  { %2116 = vrot.lane.b32.xlu2 %v2058_v60, %s2460_s8 }
 0x604   :  { %v1579_v27 = vpop.permute.xlu0 %1578 }
 0x605   :  { %v1634_v2 = vsel %vm1633_vm9, %v3504_v52, %v1579_v27  ;;  %v2060_v52 = vsel %vm1270_vm0, 0.0, %v2059_v54 }
 0x606   :  { %2084 = vrot.lane.b32.xlu1 %v2008_v44, %s2468_s13  ;;  %v1636_v37 = vsel %vm1635_vm12, %v1634_v2, %v1583_v38 }
 0x607   :  { %v1638_v15 = vsel %vm1637_vm13, %v1636_v37, %v1587_v47 }
 0x608   :  { %v1640_v24 = vsel %vm1639_vm14, %v1638_v15, %v3534_v62 }
 0x609   :  { %v1642_v38 = vsel %vm1641_vm15, %v1640_v24, %v1595_v61 }
 0x60a   :  { %v1644_v62 = vsel %vm1643_vm5, %v1642_v38, %v1599_v39 }
 0x60b   :  { %2112 = vrot.lane.b32.xlu2 %v2064_v18, %s2468_s13 }
 0x60c   :  { %v1603_v0 = vpop.permute.xlu0 %1602 }
 0x60d   :  { %v1646_v35 = vsel %vm1645_vm10, %v1644_v62, %v1603_v0 }
 0x60e   :  { %2096 = vrot.lane.b32.xlu1 %v2060_v52, %s2469_s14 }
 0x613   :  { %2120 = vrot.lane.b32.xlu2 %v2066_v12, %s2452_s26 }
 0x614   :  { %v1631_v49 = vpop.permute.xlu0 %1630 }
 0x615   :  { %v1653_v1 = vsel %vm1645_vm10, %v1652_v45, %v1631_v49 }
 0x616   :  { %v1656_v6 = vrot.slane %v1653_v1, 4  ;;  %2092 = vrot.lane.b32.xlu1 %v2010_v4, %s2452_s26 }
 0x618   :  { %v1657_v23 = vsel %vm325_vm1, %v1646_v35, %v1656_v6 }
 0x619   :  { %1659 = vst [vmem:[%s3622_s4] sm:$0xff] %v1657_v23 }
 0x64d   :  { %v2101_v50 = vpop.permute.xlu2 %2100  ;;  %v2081_v14 = vpop.permute.xlu1 %2080 }
 0x64e   :  { %v2069_v53 = vpop.permute.xlu0 %2068 }
 0x64f   :  { %v2123_v58 = vsel %vm1633_vm9, %v3526_v55, %v2069_v53 }
 0x655   :  { %v2073_v41 = vpop.permute.xlu2 %2072 }
 0x656   :  { %v2124_v61 = vsel %vm1635_vm12, %v2123_v58, %v2073_v41 }
 0x65d   :  { %v2117_v28 = vpop.permute.xlu2 %2116 }
 0x665   :  { %v2113_v59 = vpop.permute.xlu2 %2112 }
 0x668   :  { %v2105_v22 = vpop.permute.xlu1 %2104 }
 0x669   :  { %v2109_v40 = vpop.permute.xlu0 %2108 }
 0x66d   :  { %v2121_v55 = vpop.permute.xlu2 %2120 }
 0x670   :  { %v2077_v25 = vpop.permute.xlu1 %2076 }
 0x671   :  { %v2125_v48 = vsel %vm1637_vm13, %v2124_v61, %v2077_v25  ;;  %v2089_v19 = vpop.permute.xlu0 %2088 }
 0x672   :  { %v2126_v63 = vsel %vm1639_vm14, %v2125_v48, %v2081_v14 }
 0x678   :  { %v2085_v8 = vpop.permute.xlu1 %2084 }
 0x679   :  { %v2127_v20 = vsel %vm1641_vm15, %v2126_v63, %v2085_v8 }
 0x67a   :  { %v2128_v56 = vsel %vm1643_vm5, %v2127_v20, %v2089_v19 }
 0x680   :  { %v2097_v29 = vpop.permute.xlu1 %2096 }
 0x681   :  { %v2130_v3 = vsel %vm1633_vm9, %v2042_v16, %v2097_v29 }
 0x682   :  { %v2131_v32 = vsel %vm1635_vm12, %v2130_v3, %v2101_v50 }
 0x683   :  { %v2132_v30 = vsel %vm1637_vm13, %v2131_v32, %v2105_v22 }
 0x684   :  { %v2133_v39 = vsel %vm1639_vm14, %v2132_v30, %v2109_v40 }
 0x685   :  { %v2134_v31 = vsel %vm1641_vm15, %v2133_v39, %v2113_v59 }
 0x686   :  { %v2135_v57 = vsel %vm1643_vm5, %v2134_v31, %v2117_v28 }
 0x687   :  { %v2136_v51 = vsel %vm1645_vm10, %v2135_v57, %v2121_v55 }
 0x688   :  { %v2139_v21 = vrot.slane %v2136_v51, 4  ;;  %v2093_v43 = vpop.permute.xlu1 %2092 }
 0x689   :  { %v2129_v10 = vsel %vm1645_vm10, %v2128_v56, %v2093_v43 }
 0x68a   :  { %v2140_v60 = vsel %vm325_vm1, %v2129_v10, %v2139_v21 }
 0x68b   :  { %2188 = vst [vmem:[%s3622_s4 + $0x8] sm:$0xff] %v2140_v60 }

</bundles_post_ra>
